<compile_context>
chip_gen: v6e
topology: v6e:2x2x1
jax: 0.10.0
libtpu: 0.0.40
codegen_flags: <defaults>
</compile_context>

<pallas_src>
import math

import numpy as np
import jax
import jax.numpy as jnp
from jax.experimental import pallas as pl
from jax.experimental.pallas import tpu as pltpu

EPS = 1e-5  # nn.BatchNorm1d default eps
_VMEM_LIMIT = 32 * 1024 * 1024  # far above actual need; safe on v5e/v6e/v7x


def _choose_batch_block(batch, seq_len, lane_target=1024, min_steps=2):
    """Largest divisor of `batch` whose block covers <= lane_target positions while
    keeping at least `min_steps` grid steps (so v7x's two TensorCores are both fed)."""
    best = 1
    for bb in range(1, batch + 1):
        if batch % bb != 0:
            continue
        if batch // bb < min(min_steps, batch):
            continue
        if bb * seq_len <= lane_target:
            best = bb
    return best


def _compute_paths(x, wa, ba, w2, b2, valid, f, seq_len):
    """Shared per-sequence path computation.

    x: (Cin, L).  Returns p1 (F, L) and r2 (3F, L) where r2 rows are [p2; p3; p4]
    (3-tap conv path, 5-tap conv path, maxpool-projection path), all post-ReLU.
    """
    def mm(a, b):
        return jnp.dot(a, b, preferred_element_type=jnp.float32)

    def relu(v):
        return jnp.maximum(v, 0.0)

    def shifted(v, d, fill):
        # result[:, l] = v[:, l + d] within the sequence, else `fill`.
        r = pltpu.roll(v, shift=(-d) % seq_len, axis=1)  # XLU lane rotate (free-ish)
        return jnp.where(valid[d], r, fill)

    # ---- fused 1x1 stage: conv1x1 | conv1x1_3x3 | conv1x1_5x5 in ONE GEMM ----
    t = relu(mm(wa, x) + ba)                                   # (3F, L)
    p1 = t[0:f]
    t2 = t[f:2 * f]
    t3 = t[2 * f:3 * f]

    # ---- maxpool1d(k=3, s=1, pad=1); -inf fill is safe (d=0 term always present) ----
    pooled = jnp.maximum(jnp.maximum(shifted(x, -1, -jnp.inf), x),
                         shifted(x, 1, -jnp.inf))

    # ---- single fused GEMM for 3-tap conv + 5-tap conv + pool projection ----
    slab = jnp.concatenate(
        [shifted(t2, -1, 0.0), t2, shifted(t2, 1, 0.0),        # 3F rows (conv3 taps)
         shifted(t3, -2, 0.0), shifted(t3, -1, 0.0), t3,       # 5F rows (conv5 taps)
         shifted(t3, 1, 0.0), shifted(t3, 2, 0.0),
         pooled],                                              # Cin rows (pool proj)
        axis=0)                                                # (8F + Cin, L)
    r2 = relu(mm(w2, slab) + b2)                               # (3F, L)
    return p1, r2


def _make_stats_kernel(seq_len, f, b_blk):
    """Pass 1: per-grid-step per-channel BN partials (sum, sum of squares)."""
    c4 = 4 * f

    def kernel(x_ref, wa_ref, ba_ref, w2_ref, b2_ref, stats_ref):
        # Hoisted boundary masks (shared by conv taps and maxpool window).
        pos = jax.lax.broadcasted_iota(jnp.int32, (1, seq_len), 1)
        valid = {d: jnp.logical_and(pos + d >= 0, pos + d < seq_len)
                 for d in (-2, -1, 1, 2)}
        wa = wa_ref[...]
        ba = ba_ref[...]
        w2 = w2_ref[...]
        b2 = b2_ref[...]

        s1 = jnp.zeros((c4, 1), jnp.float32)
        s2 = jnp.zeros((c4, 1), jnp.float32)
        for bi in range(b_blk):  # static, small
            p1, r2 = _compute_paths(x_ref[bi], wa, ba, w2, b2, valid, f, seq_len)
            s1 = s1 + jnp.concatenate(
                [jnp.sum(p1, axis=1, keepdims=True),
                 jnp.sum(r2, axis=1, keepdims=True)], axis=0)
            s2 = s2 + jnp.concatenate(
                [jnp.sum(p1 * p1, axis=1, keepdims=True),
                 jnp.sum(r2 * r2, axis=1, keepdims=True)], axis=0)
        stats_ref[0] = jnp.concatenate([s1, s2], axis=0)       # (2*4F, 1), tiny

    return kernel


def _make_apply_kernel(seq_len, f, b_blk):
    """Pass 2: recompute paths, apply the BN affine, store straight into output slices."""
    c4 = 4 * f

    def kernel(x_ref, wa_ref, ba_ref, w2_ref, b2_ref, scale_ref, shift_ref, o_ref):
        pos = jax.lax.broadcasted_iota(jnp.int32, (1, seq_len), 1)
        valid = {d: jnp.logical_and(pos + d >= 0, pos + d < seq_len)
                 for d in (-2, -1, 1, 2)}
        wa = wa_ref[...]
        ba = ba_ref[...]
        w2 = w2_ref[...]
        b2 = b2_ref[...]
        sc1 = scale_ref[0:f]                                   # (F, 1)
        sh1 = shift_ref[0:f]
        sc2 = scale_ref[f:c4]                                  # (3F, 1)
        sh2 = shift_ref[f:c4]

        for bi in range(b_blk):  # static, small
            p1, r2 = _compute_paths(x_ref[bi], wa, ba, w2, b2, valid, f, seq_len)
            # Direct slice stores — no (4F, L) concat temp.
            o_ref[bi, 0:f, :] = p1 * sc1 + sh1
            o_ref[bi, f:c4, :] = r2 * sc2 + sh2

    return kernel


def inception_block_pallas(x_ncl, params, *, lane_target=1024):
    """x_ncl: (B, Cin, L) float32 (PyTorch NCL). Returns (B, 4*F, L)."""
    b, c_in, seq_len = x_ncl.shape
    f = params['w1'].shape[0]
    c4 = 4 * f
    n = b * seq_len
    f32 = jnp.float32

    # ---- one-time weight fusion (tiny, outside the kernels) ----
    wa = jnp.concatenate([params['w1'], params['w13'], params['w15']], axis=0)    # (3F, Cin)
    ba = jnp.concatenate([params['b1'], params['b13'], params['b15']])[:, None]   # (3F, 1)
    w3f = jnp.concatenate([params['w3'][:, :, k] for k in range(3)], axis=1)      # (F, 3F)
    w5f = jnp.concatenate([params['w5'][:, :, k] for k in range(5)], axis=1)      # (F, 5F)
    w2 = jnp.zeros((3 * f, 8 * f + c_in), f32)                                    # block-diag
    w2 = w2.at[0:f, 0:3 * f].set(w3f)
    w2 = w2.at[f:2 * f, 3 * f:8 * f].set(w5f)
    w2 = w2.at[2 * f:3 * f, 8 * f:8 * f + c_in].set(params['wp'])
    b2 = jnp.concatenate([params['b3'], params['b5'], params['bp']])[:, None]     # (3F, 1)

    b_blk = _choose_batch_block(b, seq_len, lane_target)
    n_steps = b // b_blk
    cparams = pltpu.CompilerParams(dimension_semantics=("parallel",),
                                   vmem_limit_bytes=_VMEM_LIMIT)

    x_spec = pl.BlockSpec((b_blk, c_in, seq_len), lambda i: (i, 0, 0))
    w_specs = [
        pl.BlockSpec((3 * f, c_in), lambda i: (0, 0)),          # fused 1x1 weights
        pl.BlockSpec((3 * f, 1), lambda i: (0, 0)),
        pl.BlockSpec((3 * f, 8 * f + c_in), lambda i: (0, 0)),  # fused block-diag stage-2
        pl.BlockSpec((3 * f, 1), lambda i: (0, 0)),
    ]

    # ---- pass 1: BN partial statistics only (no activation slab stored) ----
    stats = pl.pallas_call(
        _make_stats_kernel(seq_len, f, b_blk),
        grid=(n_steps,),
        in_specs=[x_spec] + w_specs,
        out_specs=pl.BlockSpec((1, 2 * c4, 1), lambda i: (i, 0, 0)),
        out_shape=jax.ShapeDtypeStruct((n_steps, 2 * c4, 1), f32),
        compiler_params=cparams,
    )(x_ncl, wa, ba, w2, b2)

    # ---- tiny cross-step combine (plain JAX): global mean/var -> per-channel affine ----
    s = jnp.sum(stats, axis=0)[:, 0]                      # (2*4F,)
    mean = s[:c4] / n
    var = s[c4:] / n - mean * mean                        # biased var (training-mode BN)
    scale = params['gamma'] * jax.lax.rsqrt(var + EPS)
    shift = params['beta'] - mean * scale

    # ---- pass 2: recompute paths + apply BN affine, direct NCL output store ----
    y = pl.pallas_call(
        _make_apply_kernel(seq_len, f, b_blk),
        grid=(n_steps,),
        in_specs=[x_spec] + w_specs + [
            pl.BlockSpec((c4, 1), lambda i: (0, 0)),
            pl.BlockSpec((c4, 1), lambda i: (0, 0)),
        ],
        out_specs=pl.BlockSpec((b_blk, c4, seq_len), lambda i: (i, 0, 0)),
        out_shape=jax.ShapeDtypeStruct((b, c4, seq_len), f32),
        compiler_params=cparams,
    )(x_ncl, wa, ba, w2, b2, scale[:, None], shift[:, None])

    return y


def reference_forward(x_ncl, p):
    """Pure-JAX reference (lax.conv) mirroring the PyTorch forward exactly."""
    def conv1d(x, w, bias, pad):
        y = jax.lax.conv_general_dilated(
            x, w, window_strides=(1,), padding=[(pad, pad)],
            dimension_numbers=('NCH', 'OIH', 'NCH'))
        return y + bias[None, :, None]

    relu = jax.nn.relu
    path1 = relu(conv1d(x_ncl, p['w1'][:, :, None], p['b1'], 0))
    path2 = relu(conv1d(relu(conv1d(x_ncl, p['w13'][:, :, None], p['b13'], 0)),
                        p['w3'], p['b3'], 1))
    path3 = relu(conv1d(relu(conv1d(x_ncl, p['w15'][:, :, None], p['b15'], 0)),
                        p['w5'], p['b5'], 2))
    seq_len = x_ncl.shape[2]
    xp = jnp.pad(x_ncl, ((0, 0), (0, 0), (1, 1)), constant_values=-jnp.inf)
    pooled = jnp.maximum(jnp.maximum(xp[:, :, 0:seq_len], xp[:, :, 1:seq_len + 1]),
                         xp[:, :, 2:seq_len + 2])
    path4 = relu(conv1d(pooled, p['wp'][:, :, None], p['bp'], 0))

    out = jnp.concatenate([path1, path2, path3, path4], axis=1)
    mean = out.mean(axis=(0, 2), keepdims=True)
    var = ((out - mean) ** 2).mean(axis=(0, 2), keepdims=True)
    gamma = p['gamma'][None, :, None]
    beta = p['beta'][None, :, None]
    return (out - mean) / jnp.sqrt(var + EPS) * gamma + beta


if __name__ == "__main__":
    # input_channels=21 (module default), filters=8; B=4, L=256 -> 2 parallel grid steps.
    B, Cin, L, F = 4, 21, 256, 8

    key = jax.random.PRNGKey(0)
    kx, *kp = jax.random.split(key, 16)

    def init(k, shape):
        return (0.1 * jax.random.normal(k, shape)).astype(jnp.float32)

    params = {
        'w1':  init(kp[0], (F, Cin)),  'b1':  init(kp[1], (F,)),
        'w13': init(kp[2], (F, Cin)),  'b13': init(kp[3], (F,)),
        'w3':  init(kp[4], (F, F, 3)), 'b3':  init(kp[5], (F,)),
        'w15': init(kp[6], (F, Cin)),  'b15': init(kp[7], (F,)),
        'w5':  init(kp[8], (F, F, 5)), 'b5':  init(kp[9], (F,)),
        'wp':  init(kp[10], (F, Cin)), 'bp':  init(kp[11], (F,)),
        # nn.BatchNorm1d default affine init (weight=1, bias=0)
        'gamma': jnp.ones((4 * F,), jnp.float32),
        'beta':  jnp.zeros((4 * F,), jnp.float32),
    }

    x = jax.random.normal(kx, (B, Cin, L), jnp.float32)

    out = jax.jit(inception_block_pallas)(x, params)
    jax.block_until_ready(out)
    assert out.shape == (B, 4 * F, L)

    ref = reference_forward(x, params)
    np.testing.assert_allclose(np.asarray(out), np.asarray(ref), rtol=2e-4, atol=2e-4)
    print("KERNEL_OK")
</pallas_src>

<mosaic_0001>
module attributes {stable_mosaic.version = 11 : i64} {
  func.func @kernel(%arg0: i32, %arg1: memref<2x21x256xf32, #tpu.memory_space<vmem>>, %arg2: memref<24x21xf32, #tpu.memory_space<vmem>>, %arg3: memref<24x1xf32, #tpu.memory_space<vmem>>, %arg4: memref<24x85xf32, #tpu.memory_space<vmem>>, %arg5: memref<24x1xf32, #tpu.memory_space<vmem>>, %arg6: memref<1x64x1xf32, #tpu.memory_space<vmem>>) attributes {dimension_semantics = [#tpu.dimension_semantics<parallel>], iteration_bounds = array<i64: 2>, scalar_prefetch = 0 : i64, scratch_operands = 0 : i64, tpu.core_type = #tpu.core_type<tc>, window_params = [{transform_indices = @transform_0, window_bounds = array<i64: 2, 21, 256>}, {pipeline_mode = #tpu.pipeline_mode<synchronous>, transform_indices = @transform_1, window_bounds = array<i64: 24, 21>}, {pipeline_mode = #tpu.pipeline_mode<synchronous>, transform_indices = @transform_2, window_bounds = array<i64: 24, 1>}, {pipeline_mode = #tpu.pipeline_mode<synchronous>, transform_indices = @transform_3, window_bounds = array<i64: 24, 85>}, {pipeline_mode = #tpu.pipeline_mode<synchronous>, transform_indices = @transform_4, window_bounds = array<i64: 24, 1>}, {transform_indices = @transform_5, window_bounds = array<i64: 1, 64, 1>}]} {
    %0 = tpu.iota {dimensions = array<i32: 1>} : vector<1x256xi32>
    %c-2_i32 = arith.constant -2 : i32
    %1 = vector.broadcast %c-2_i32 : i32 to vector<1x256xi32>
    %2 = arith.addi %0, %1 : vector<1x256xi32>
    %c0_i32 = arith.constant 0 : i32
    %3 = vector.broadcast %c0_i32 : i32 to vector<1x256xi32>
    %4 = arith.cmpi sge, %2, %3 : vector<1x256xi32>
    %c-2_i32_0 = arith.constant -2 : i32
    %5 = vector.broadcast %c-2_i32_0 : i32 to vector<1x256xi32>
    %6 = arith.addi %0, %5 : vector<1x256xi32>
    %c256_i32 = arith.constant 256 : i32
    %7 = vector.broadcast %c256_i32 : i32 to vector<1x256xi32>
    %8 = arith.cmpi slt, %6, %7 : vector<1x256xi32>
    %9 = arith.andi %4, %8 : vector<1x256xi1>
    %c-1_i32 = arith.constant -1 : i32
    %10 = vector.broadcast %c-1_i32 : i32 to vector<1x256xi32>
    %11 = arith.addi %0, %10 : vector<1x256xi32>
    %c0_i32_1 = arith.constant 0 : i32
    %12 = vector.broadcast %c0_i32_1 : i32 to vector<1x256xi32>
    %13 = arith.cmpi sge, %11, %12 : vector<1x256xi32>
    %c-1_i32_2 = arith.constant -1 : i32
    %14 = vector.broadcast %c-1_i32_2 : i32 to vector<1x256xi32>
    %15 = arith.addi %0, %14 : vector<1x256xi32>
    %c256_i32_3 = arith.constant 256 : i32
    %16 = vector.broadcast %c256_i32_3 : i32 to vector<1x256xi32>
    %17 = arith.cmpi slt, %15, %16 : vector<1x256xi32>
    %18 = arith.andi %13, %17 : vector<1x256xi1>
    %c1_i32 = arith.constant 1 : i32
    %19 = vector.broadcast %c1_i32 : i32 to vector<1x256xi32>
    %20 = arith.addi %0, %19 : vector<1x256xi32>
    %c0_i32_4 = arith.constant 0 : i32
    %21 = vector.broadcast %c0_i32_4 : i32 to vector<1x256xi32>
    %22 = arith.cmpi sge, %20, %21 : vector<1x256xi32>
    %c1_i32_5 = arith.constant 1 : i32
    %23 = vector.broadcast %c1_i32_5 : i32 to vector<1x256xi32>
    %24 = arith.addi %0, %23 : vector<1x256xi32>
    %c256_i32_6 = arith.constant 256 : i32
    %25 = vector.broadcast %c256_i32_6 : i32 to vector<1x256xi32>
    %26 = arith.cmpi slt, %24, %25 : vector<1x256xi32>
    %27 = arith.andi %22, %26 : vector<1x256xi1>
    %c2_i32 = arith.constant 2 : i32
    %28 = vector.broadcast %c2_i32 : i32 to vector<1x256xi32>
    %29 = arith.addi %0, %28 : vector<1x256xi32>
    %c0_i32_7 = arith.constant 0 : i32
    %30 = vector.broadcast %c0_i32_7 : i32 to vector<1x256xi32>
    %31 = arith.cmpi sge, %29, %30 : vector<1x256xi32>
    %c2_i32_8 = arith.constant 2 : i32
    %32 = vector.broadcast %c2_i32_8 : i32 to vector<1x256xi32>
    %33 = arith.addi %0, %32 : vector<1x256xi32>
    %c256_i32_9 = arith.constant 256 : i32
    %34 = vector.broadcast %c256_i32_9 : i32 to vector<1x256xi32>
    %35 = arith.cmpi slt, %33, %34 : vector<1x256xi32>
    %36 = arith.andi %31, %35 : vector<1x256xi1>
    %c0 = arith.constant 0 : index
    %c0_10 = arith.constant 0 : index
    %37 = vector.load %arg2[%c0, %c0_10] : memref<24x21xf32, #tpu.memory_space<vmem>>, vector<24x21xf32>
    %c0_11 = arith.constant 0 : index
    %c0_12 = arith.constant 0 : index
    %38 = vector.load %arg3[%c0_11, %c0_12] : memref<24x1xf32, #tpu.memory_space<vmem>>, vector<24x1xf32>
    %c0_13 = arith.constant 0 : index
    %c0_14 = arith.constant 0 : index
    %39 = vector.load %arg4[%c0_13, %c0_14] : memref<24x85xf32, #tpu.memory_space<vmem>>, vector<24x85xf32>
    %c0_15 = arith.constant 0 : index
    %c0_16 = arith.constant 0 : index
    %40 = vector.load %arg5[%c0_15, %c0_16] : memref<24x1xf32, #tpu.memory_space<vmem>>, vector<24x1xf32>
    %cst = arith.constant 0.000000e+00 : f32
    %41 = vector.broadcast %cst : f32 to vector<32x1xf32>
    %cst_17 = arith.constant 0.000000e+00 : f32
    %42 = vector.broadcast %cst_17 : f32 to vector<32x1xf32>
    %c0_18 = arith.constant 0 : index
    %c0_19 = arith.constant 0 : index
    %c0_20 = arith.constant 0 : index
    %43 = vector.load %arg1[%c0_18, %c0_19, %c0_20] : memref<2x21x256xf32, #tpu.memory_space<vmem>>, vector<1x21x256xf32>
    %44 = vector.shape_cast %43 : vector<1x21x256xf32> to vector<21x256xf32>
    %cst_21 = arith.constant dense<0.000000e+00> : vector<24x256xf32>
    %45 = tpu.matmul %37, %44, %cst_21 {dimension_numbers = #tpu.dot_dimension_numbers<[1], [0], [0], [1], [0, 0, 1, 1], [], []>} : vector<24x21xf32>, vector<21x256xf32>, vector<24x256xf32> -> vector<24x256xf32>
    %46 = vector.broadcast %38 : vector<24x1xf32> to vector<24x256xf32>
    %47 = arith.addf %45, %46 : vector<24x256xf32>
    %cst_22 = arith.constant 0.000000e+00 : f32
    %48 = vector.broadcast %cst_22 : f32 to vector<24x256xf32>
    %49 = arith.maximumf %47, %48 : vector<24x256xf32>
    %50 = vector.extract_strided_slice %49 {offsets = [0, 0], sizes = [8, 256], strides = [1, 1]} : vector<24x256xf32> to vector<8x256xf32>
    %51 = vector.extract_strided_slice %49 {offsets = [8, 0], sizes = [8, 256], strides = [1, 1]} : vector<24x256xf32> to vector<8x256xf32>
    %52 = vector.extract_strided_slice %49 {offsets = [16, 0], sizes = [8, 256], strides = [1, 1]} : vector<24x256xf32> to vector<8x256xf32>
    %c1_i32_23 = arith.constant 1 : i32
    %53 = tpu.dynamic_rotate %44 by %c1_i32_23 dim 1 : vector<21x256xf32>, i32 -> vector<21x256xf32>
    %cst_24 = arith.constant 0xFF800000 : f32
    %54 = vector.shape_cast %18 : vector<1x256xi1> to vector<1x256xi1>
    %55 = vector.broadcast %54 : vector<1x256xi1> to vector<21x256xi1>
    %56 = vector.broadcast %cst_24 : f32 to vector<21x256xf32>
    %57 = arith.select %55, %53, %56 : vector<21x256xi1>, vector<21x256xf32>
    %58 = arith.maximumf %57, %44 : vector<21x256xf32>
    %c255_i32 = arith.constant 255 : i32
    %59 = tpu.dynamic_rotate %44 by %c255_i32 dim 1 : vector<21x256xf32>, i32 -> vector<21x256xf32>
    %cst_25 = arith.constant 0xFF800000 : f32
    %60 = vector.shape_cast %27 : vector<1x256xi1> to vector<1x256xi1>
    %61 = vector.broadcast %60 : vector<1x256xi1> to vector<21x256xi1>
    %62 = vector.broadcast %cst_25 : f32 to vector<21x256xf32>
    %63 = arith.select %61, %59, %62 : vector<21x256xi1>, vector<21x256xf32>
    %64 = arith.maximumf %58, %63 : vector<21x256xf32>
    %c1_i32_26 = arith.constant 1 : i32
    %65 = tpu.dynamic_rotate %51 by %c1_i32_26 dim 1 : vector<8x256xf32>, i32 -> vector<8x256xf32>
    %cst_27 = arith.constant 0.000000e+00 : f32
    %66 = vector.shape_cast %18 : vector<1x256xi1> to vector<1x256xi1>
    %67 = vector.broadcast %66 : vector<1x256xi1> to vector<8x256xi1>
    %68 = vector.broadcast %cst_27 : f32 to vector<8x256xf32>
    %69 = arith.select %67, %65, %68 : vector<8x256xi1>, vector<8x256xf32>
    %c255_i32_28 = arith.constant 255 : i32
    %70 = tpu.dynamic_rotate %51 by %c255_i32_28 dim 1 : vector<8x256xf32>, i32 -> vector<8x256xf32>
    %cst_29 = arith.constant 0.000000e+00 : f32
    %71 = vector.shape_cast %27 : vector<1x256xi1> to vector<1x256xi1>
    %72 = vector.broadcast %71 : vector<1x256xi1> to vector<8x256xi1>
    %73 = vector.broadcast %cst_29 : f32 to vector<8x256xf32>
    %74 = arith.select %72, %70, %73 : vector<8x256xi1>, vector<8x256xf32>
    %c2_i32_30 = arith.constant 2 : i32
    %75 = tpu.dynamic_rotate %52 by %c2_i32_30 dim 1 : vector<8x256xf32>, i32 -> vector<8x256xf32>
    %cst_31 = arith.constant 0.000000e+00 : f32
    %76 = vector.shape_cast %9 : vector<1x256xi1> to vector<1x256xi1>
    %77 = vector.broadcast %76 : vector<1x256xi1> to vector<8x256xi1>
    %78 = vector.broadcast %cst_31 : f32 to vector<8x256xf32>
    %79 = arith.select %77, %75, %78 : vector<8x256xi1>, vector<8x256xf32>
    %c1_i32_32 = arith.constant 1 : i32
    %80 = tpu.dynamic_rotate %52 by %c1_i32_32 dim 1 : vector<8x256xf32>, i32 -> vector<8x256xf32>
    %cst_33 = arith.constant 0.000000e+00 : f32
    %81 = vector.shape_cast %18 : vector<1x256xi1> to vector<1x256xi1>
    %82 = vector.broadcast %81 : vector<1x256xi1> to vector<8x256xi1>
    %83 = vector.broadcast %cst_33 : f32 to vector<8x256xf32>
    %84 = arith.select %82, %80, %83 : vector<8x256xi1>, vector<8x256xf32>
    %c255_i32_34 = arith.constant 255 : i32
    %85 = tpu.dynamic_rotate %52 by %c255_i32_34 dim 1 : vector<8x256xf32>, i32 -> vector<8x256xf32>
    %cst_35 = arith.constant 0.000000e+00 : f32
    %86 = vector.shape_cast %27 : vector<1x256xi1> to vector<1x256xi1>
    %87 = vector.broadcast %86 : vector<1x256xi1> to vector<8x256xi1>
    %88 = vector.broadcast %cst_35 : f32 to vector<8x256xf32>
    %89 = arith.select %87, %85, %88 : vector<8x256xi1>, vector<8x256xf32>
    %c254_i32 = arith.constant 254 : i32
    %90 = tpu.dynamic_rotate %52 by %c254_i32 dim 1 : vector<8x256xf32>, i32 -> vector<8x256xf32>
    %cst_36 = arith.constant 0.000000e+00 : f32
    %91 = vector.shape_cast %36 : vector<1x256xi1> to vector<1x256xi1>
    %92 = vector.broadcast %91 : vector<1x256xi1> to vector<8x256xi1>
    %93 = vector.broadcast %cst_36 : f32 to vector<8x256xf32>
    %94 = arith.select %92, %90, %93 : vector<8x256xi1>, vector<8x256xf32>
    %95 = tpu.concatenate %69, %51, %74, %79, %84, %52, %89, %94, %64 in 0 : vector<8x256xf32>, vector<8x256xf32>, vector<8x256xf32>, vector<8x256xf32>, vector<8x256xf32>, vector<8x256xf32>, vector<8x256xf32>, vector<8x256xf32>, vector<21x256xf32> -> vector<85x256xf32>
    %cst_37 = arith.constant dense<0.000000e+00> : vector<24x256xf32>
    %96 = tpu.matmul %39, %95, %cst_37 {dimension_numbers = #tpu.dot_dimension_numbers<[1], [0], [0], [1], [0, 0, 1, 1], [], []>} : vector<24x85xf32>, vector<85x256xf32>, vector<24x256xf32> -> vector<24x256xf32>
    %97 = vector.broadcast %40 : vector<24x1xf32> to vector<24x256xf32>
    %98 = arith.addf %96, %97 : vector<24x256xf32>
    %cst_38 = arith.constant 0.000000e+00 : f32
    %99 = vector.broadcast %cst_38 : f32 to vector<24x256xf32>
    %100 = arith.maximumf %98, %99 : vector<24x256xf32>
    %cst_39 = arith.constant dense<0.000000e+00> : vector<8xf32>
    %101 = vector.multi_reduction <add>, %50, %cst_39 [1] : vector<8x256xf32> to vector<8xf32>
    %102 = vector.shape_cast %101 : vector<8xf32> to vector<8x1xf32>
    %cst_40 = arith.constant dense<0.000000e+00> : vector<24xf32>
    %103 = vector.multi_reduction <add>, %100, %cst_40 [1] : vector<24x256xf32> to vector<24xf32>
    %104 = vector.shape_cast %103 : vector<24xf32> to vector<24x1xf32>
    %105 = tpu.concatenate %102, %104 in 0 : vector<8x1xf32>, vector<24x1xf32> -> vector<32x1xf32>
    %106 = arith.addf %41, %105 : vector<32x1xf32>
    %107 = arith.mulf %50, %50 : vector<8x256xf32>
    %cst_41 = arith.constant dense<0.000000e+00> : vector<8xf32>
    %108 = vector.multi_reduction <add>, %107, %cst_41 [1] : vector<8x256xf32> to vector<8xf32>
    %109 = vector.shape_cast %108 : vector<8xf32> to vector<8x1xf32>
    %110 = arith.mulf %100, %100 : vector<24x256xf32>
    %cst_42 = arith.constant dense<0.000000e+00> : vector<24xf32>
    %111 = vector.multi_reduction <add>, %110, %cst_42 [1] : vector<24x256xf32> to vector<24xf32>
    %112 = vector.shape_cast %111 : vector<24xf32> to vector<24x1xf32>
    %113 = tpu.concatenate %109, %112 in 0 : vector<8x1xf32>, vector<24x1xf32> -> vector<32x1xf32>
    %114 = arith.addf %42, %113 : vector<32x1xf32>
    %c1 = arith.constant 1 : index
    %c0_43 = arith.constant 0 : index
    %c0_44 = arith.constant 0 : index
    %115 = vector.load %arg1[%c1, %c0_43, %c0_44] : memref<2x21x256xf32, #tpu.memory_space<vmem>>, vector<1x21x256xf32>
    %116 = vector.shape_cast %115 : vector<1x21x256xf32> to vector<21x256xf32>
    %cst_45 = arith.constant dense<0.000000e+00> : vector<24x256xf32>
    %117 = tpu.matmul %37, %116, %cst_45 {dimension_numbers = #tpu.dot_dimension_numbers<[1], [0], [0], [1], [0, 0, 1, 1], [], []>} : vector<24x21xf32>, vector<21x256xf32>, vector<24x256xf32> -> vector<24x256xf32>
    %118 = vector.broadcast %38 : vector<24x1xf32> to vector<24x256xf32>
    %119 = arith.addf %117, %118 : vector<24x256xf32>
    %cst_46 = arith.constant 0.000000e+00 : f32
    %120 = vector.broadcast %cst_46 : f32 to vector<24x256xf32>
    %121 = arith.maximumf %119, %120 : vector<24x256xf32>
    %122 = vector.extract_strided_slice %121 {offsets = [0, 0], sizes = [8, 256], strides = [1, 1]} : vector<24x256xf32> to vector<8x256xf32>
    %123 = vector.extract_strided_slice %121 {offsets = [8, 0], sizes = [8, 256], strides = [1, 1]} : vector<24x256xf32> to vector<8x256xf32>
    %124 = vector.extract_strided_slice %121 {offsets = [16, 0], sizes = [8, 256], strides = [1, 1]} : vector<24x256xf32> to vector<8x256xf32>
    %c1_i32_47 = arith.constant 1 : i32
    %125 = tpu.dynamic_rotate %116 by %c1_i32_47 dim 1 : vector<21x256xf32>, i32 -> vector<21x256xf32>
    %cst_48 = arith.constant 0xFF800000 : f32
    %126 = vector.shape_cast %18 : vector<1x256xi1> to vector<1x256xi1>
    %127 = vector.broadcast %126 : vector<1x256xi1> to vector<21x256xi1>
    %128 = vector.broadcast %cst_48 : f32 to vector<21x256xf32>
    %129 = arith.select %127, %125, %128 : vector<21x256xi1>, vector<21x256xf32>
    %130 = arith.maximumf %129, %116 : vector<21x256xf32>
    %c255_i32_49 = arith.constant 255 : i32
    %131 = tpu.dynamic_rotate %116 by %c255_i32_49 dim 1 : vector<21x256xf32>, i32 -> vector<21x256xf32>
    %cst_50 = arith.constant 0xFF800000 : f32
    %132 = vector.shape_cast %27 : vector<1x256xi1> to vector<1x256xi1>
    %133 = vector.broadcast %132 : vector<1x256xi1> to vector<21x256xi1>
    %134 = vector.broadcast %cst_50 : f32 to vector<21x256xf32>
    %135 = arith.select %133, %131, %134 : vector<21x256xi1>, vector<21x256xf32>
    %136 = arith.maximumf %130, %135 : vector<21x256xf32>
    %c1_i32_51 = arith.constant 1 : i32
    %137 = tpu.dynamic_rotate %123 by %c1_i32_51 dim 1 : vector<8x256xf32>, i32 -> vector<8x256xf32>
    %cst_52 = arith.constant 0.000000e+00 : f32
    %138 = vector.shape_cast %18 : vector<1x256xi1> to vector<1x256xi1>
    %139 = vector.broadcast %138 : vector<1x256xi1> to vector<8x256xi1>
    %140 = vector.broadcast %cst_52 : f32 to vector<8x256xf32>
    %141 = arith.select %139, %137, %140 : vector<8x256xi1>, vector<8x256xf32>
    %c255_i32_53 = arith.constant 255 : i32
    %142 = tpu.dynamic_rotate %123 by %c255_i32_53 dim 1 : vector<8x256xf32>, i32 -> vector<8x256xf32>
    %cst_54 = arith.constant 0.000000e+00 : f32
    %143 = vector.shape_cast %27 : vector<1x256xi1> to vector<1x256xi1>
    %144 = vector.broadcast %143 : vector<1x256xi1> to vector<8x256xi1>
    %145 = vector.broadcast %cst_54 : f32 to vector<8x256xf32>
    %146 = arith.select %144, %142, %145 : vector<8x256xi1>, vector<8x256xf32>
    %c2_i32_55 = arith.constant 2 : i32
    %147 = tpu.dynamic_rotate %124 by %c2_i32_55 dim 1 : vector<8x256xf32>, i32 -> vector<8x256xf32>
    %cst_56 = arith.constant 0.000000e+00 : f32
    %148 = vector.shape_cast %9 : vector<1x256xi1> to vector<1x256xi1>
    %149 = vector.broadcast %148 : vector<1x256xi1> to vector<8x256xi1>
    %150 = vector.broadcast %cst_56 : f32 to vector<8x256xf32>
    %151 = arith.select %149, %147, %150 : vector<8x256xi1>, vector<8x256xf32>
    %c1_i32_57 = arith.constant 1 : i32
    %152 = tpu.dynamic_rotate %124 by %c1_i32_57 dim 1 : vector<8x256xf32>, i32 -> vector<8x256xf32>
    %cst_58 = arith.constant 0.000000e+00 : f32
    %153 = vector.shape_cast %18 : vector<1x256xi1> to vector<1x256xi1>
    %154 = vector.broadcast %153 : vector<1x256xi1> to vector<8x256xi1>
    %155 = vector.broadcast %cst_58 : f32 to vector<8x256xf32>
    %156 = arith.select %154, %152, %155 : vector<8x256xi1>, vector<8x256xf32>
    %c255_i32_59 = arith.constant 255 : i32
    %157 = tpu.dynamic_rotate %124 by %c255_i32_59 dim 1 : vector<8x256xf32>, i32 -> vector<8x256xf32>
    %cst_60 = arith.constant 0.000000e+00 : f32
    %158 = vector.shape_cast %27 : vector<1x256xi1> to vector<1x256xi1>
    %159 = vector.broadcast %158 : vector<1x256xi1> to vector<8x256xi1>
    %160 = vector.broadcast %cst_60 : f32 to vector<8x256xf32>
    %161 = arith.select %159, %157, %160 : vector<8x256xi1>, vector<8x256xf32>
    %c254_i32_61 = arith.constant 254 : i32
    %162 = tpu.dynamic_rotate %124 by %c254_i32_61 dim 1 : vector<8x256xf32>, i32 -> vector<8x256xf32>
    %cst_62 = arith.constant 0.000000e+00 : f32
    %163 = vector.shape_cast %36 : vector<1x256xi1> to vector<1x256xi1>
    %164 = vector.broadcast %163 : vector<1x256xi1> to vector<8x256xi1>
    %165 = vector.broadcast %cst_62 : f32 to vector<8x256xf32>
    %166 = arith.select %164, %162, %165 : vector<8x256xi1>, vector<8x256xf32>
    %167 = tpu.concatenate %141, %123, %146, %151, %156, %124, %161, %166, %136 in 0 : vector<8x256xf32>, vector<8x256xf32>, vector<8x256xf32>, vector<8x256xf32>, vector<8x256xf32>, vector<8x256xf32>, vector<8x256xf32>, vector<8x256xf32>, vector<21x256xf32> -> vector<85x256xf32>
    %cst_63 = arith.constant dense<0.000000e+00> : vector<24x256xf32>
    %168 = tpu.matmul %39, %167, %cst_63 {dimension_numbers = #tpu.dot_dimension_numbers<[1], [0], [0], [1], [0, 0, 1, 1], [], []>} : vector<24x85xf32>, vector<85x256xf32>, vector<24x256xf32> -> vector<24x256xf32>
    %169 = vector.broadcast %40 : vector<24x1xf32> to vector<24x256xf32>
    %170 = arith.addf %168, %169 : vector<24x256xf32>
    %cst_64 = arith.constant 0.000000e+00 : f32
    %171 = vector.broadcast %cst_64 : f32 to vector<24x256xf32>
    %172 = arith.maximumf %170, %171 : vector<24x256xf32>
    %cst_65 = arith.constant dense<0.000000e+00> : vector<8xf32>
    %173 = vector.multi_reduction <add>, %122, %cst_65 [1] : vector<8x256xf32> to vector<8xf32>
    %174 = vector.shape_cast %173 : vector<8xf32> to vector<8x1xf32>
    %cst_66 = arith.constant dense<0.000000e+00> : vector<24xf32>
    %175 = vector.multi_reduction <add>, %172, %cst_66 [1] : vector<24x256xf32> to vector<24xf32>
    %176 = vector.shape_cast %175 : vector<24xf32> to vector<24x1xf32>
    %177 = tpu.concatenate %174, %176 in 0 : vector<8x1xf32>, vector<24x1xf32> -> vector<32x1xf32>
    %178 = arith.addf %106, %177 : vector<32x1xf32>
    %179 = arith.mulf %122, %122 : vector<8x256xf32>
    %cst_67 = arith.constant dense<0.000000e+00> : vector<8xf32>
    %180 = vector.multi_reduction <add>, %179, %cst_67 [1] : vector<8x256xf32> to vector<8xf32>
    %181 = vector.shape_cast %180 : vector<8xf32> to vector<8x1xf32>
    %182 = arith.mulf %172, %172 : vector<24x256xf32>
    %cst_68 = arith.constant dense<0.000000e+00> : vector<24xf32>
    %183 = vector.multi_reduction <add>, %182, %cst_68 [1] : vector<24x256xf32> to vector<24xf32>
    %184 = vector.shape_cast %183 : vector<24xf32> to vector<24x1xf32>
    %185 = tpu.concatenate %181, %184 in 0 : vector<8x1xf32>, vector<24x1xf32> -> vector<32x1xf32>
    %186 = arith.addf %114, %185 : vector<32x1xf32>
    %187 = tpu.concatenate %178, %186 in 0 : vector<32x1xf32>, vector<32x1xf32> -> vector<64x1xf32>
    %c0_69 = arith.constant 0 : index
    %c0_70 = arith.constant 0 : index
    %c0_71 = arith.constant 0 : index
    %188 = vector.load %arg6[%c0_69, %c0_70, %c0_71] : memref<1x64x1xf32, #tpu.memory_space<vmem>>, vector<1x64x1xf32>
    %189 = vector.shape_cast %188 : vector<1x64x1xf32> to vector<64x1xf32>
    %190 = vector.shape_cast %187 : vector<64x1xf32> to vector<1x64x1xf32>
    tpu.vector_store %arg6[%c0_69, %c0_70, %c0_71], %190 {strides = array<i32>} : memref<1x64x1xf32, #tpu.memory_space<vmem>>, vector<1x64x1xf32>,
    return
  }
  func.func @transform_0(%arg0: i32) -> (i32, i32, i32) {
    %c0_i32 = arith.constant 0 : i32
    %c0_i32_0 = arith.constant 0 : i32
    %c0_i32_1 = arith.constant 0 : i32
    return %arg0, %c0_i32, %c0_i32_0 : i32, i32, i32
  }
  func.func @transform_1(%arg0: i32) -> (i32, i32) {
    %c0_i32 = arith.constant 0 : i32
    %c0_i32_0 = arith.constant 0 : i32
    %c0_i32_1 = arith.constant 0 : i32
    return %c0_i32, %c0_i32_0 : i32, i32
  }
  func.func @transform_2(%arg0: i32) -> (i32, i32) {
    %c0_i32 = arith.constant 0 : i32
    %c0_i32_0 = arith.constant 0 : i32
    %c0_i32_1 = arith.constant 0 : i32
    return %c0_i32, %c0_i32_0 : i32, i32
  }
  func.func @transform_3(%arg0: i32) -> (i32, i32) {
    %c0_i32 = arith.constant 0 : i32
    %c0_i32_0 = arith.constant 0 : i32
    %c0_i32_1 = arith.constant 0 : i32
    return %c0_i32, %c0_i32_0 : i32, i32
  }
  func.func @transform_4(%arg0: i32) -> (i32, i32) {
    %c0_i32 = arith.constant 0 : i32
    %c0_i32_0 = arith.constant 0 : i32
    %c0_i32_1 = arith.constant 0 : i32
    return %c0_i32, %c0_i32_0 : i32, i32
  }
  func.func @transform_5(%arg0: i32) -> (i32, i32, i32) {
    %c0_i32 = arith.constant 0 : i32
    %c0_i32_0 = arith.constant 0 : i32
    %c0_i32_1 = arith.constant 0 : i32
    return %arg0, %c0_i32, %c0_i32_0 : i32, i32, i32
  }
}

module attributes {stable_mosaic.version = 11 : i64} {
  func.func @kernel(%arg0: i32, %arg1: memref<2x21x256xf32, #tpu.memory_space<vmem>>, %arg2: memref<24x21xf32, #tpu.memory_space<vmem>>, %arg3: memref<24x1xf32, #tpu.memory_space<vmem>>, %arg4: memref<24x85xf32, #tpu.memory_space<vmem>>, %arg5: memref<24x1xf32, #tpu.memory_space<vmem>>, %arg6: memref<32x1xf32, #tpu.memory_space<vmem>>, %arg7: memref<32x1xf32, #tpu.memory_space<vmem>>, %arg8: memref<2x32x256xf32, #tpu.memory_space<vmem>>) attributes {dimension_semantics = [#tpu.dimension_semantics<parallel>], iteration_bounds = array<i64: 2>, scalar_prefetch = 0 : i64, scratch_operands = 0 : i64, tpu.core_type = #tpu.core_type<tc>, window_params = [{transform_indices = @transform_0, window_bounds = array<i64: 2, 21, 256>}, {pipeline_mode = #tpu.pipeline_mode<synchronous>, transform_indices = @transform_1, window_bounds = array<i64: 24, 21>}, {pipeline_mode = #tpu.pipeline_mode<synchronous>, transform_indices = @transform_2, window_bounds = array<i64: 24, 1>}, {pipeline_mode = #tpu.pipeline_mode<synchronous>, transform_indices = @transform_3, window_bounds = array<i64: 24, 85>}, {pipeline_mode = #tpu.pipeline_mode<synchronous>, transform_indices = @transform_4, window_bounds = array<i64: 24, 1>}, {pipeline_mode = #tpu.pipeline_mode<synchronous>, transform_indices = @transform_5, window_bounds = array<i64: 32, 1>}, {pipeline_mode = #tpu.pipeline_mode<synchronous>, transform_indices = @transform_6, window_bounds = array<i64: 32, 1>}, {transform_indices = @transform_7, window_bounds = array<i64: 2, 32, 256>}]} {
    %0 = tpu.iota {dimensions = array<i32: 1>} : vector<1x256xi32>
    %c-2_i32 = arith.constant -2 : i32
    %1 = vector.broadcast %c-2_i32 : i32 to vector<1x256xi32>
    %2 = arith.addi %0, %1 : vector<1x256xi32>
    %c0_i32 = arith.constant 0 : i32
    %3 = vector.broadcast %c0_i32 : i32 to vector<1x256xi32>
    %4 = arith.cmpi sge, %2, %3 : vector<1x256xi32>
    %c-2_i32_0 = arith.constant -2 : i32
    %5 = vector.broadcast %c-2_i32_0 : i32 to vector<1x256xi32>
    %6 = arith.addi %0, %5 : vector<1x256xi32>
    %c256_i32 = arith.constant 256 : i32
    %7 = vector.broadcast %c256_i32 : i32 to vector<1x256xi32>
    %8 = arith.cmpi slt, %6, %7 : vector<1x256xi32>
    %9 = arith.andi %4, %8 : vector<1x256xi1>
    %c-1_i32 = arith.constant -1 : i32
    %10 = vector.broadcast %c-1_i32 : i32 to vector<1x256xi32>
    %11 = arith.addi %0, %10 : vector<1x256xi32>
    %c0_i32_1 = arith.constant 0 : i32
    %12 = vector.broadcast %c0_i32_1 : i32 to vector<1x256xi32>
    %13 = arith.cmpi sge, %11, %12 : vector<1x256xi32>
    %c-1_i32_2 = arith.constant -1 : i32
    %14 = vector.broadcast %c-1_i32_2 : i32 to vector<1x256xi32>
    %15 = arith.addi %0, %14 : vector<1x256xi32>
    %c256_i32_3 = arith.constant 256 : i32
    %16 = vector.broadcast %c256_i32_3 : i32 to vector<1x256xi32>
    %17 = arith.cmpi slt, %15, %16 : vector<1x256xi32>
    %18 = arith.andi %13, %17 : vector<1x256xi1>
    %c1_i32 = arith.constant 1 : i32
    %19 = vector.broadcast %c1_i32 : i32 to vector<1x256xi32>
    %20 = arith.addi %0, %19 : vector<1x256xi32>
    %c0_i32_4 = arith.constant 0 : i32
    %21 = vector.broadcast %c0_i32_4 : i32 to vector<1x256xi32>
    %22 = arith.cmpi sge, %20, %21 : vector<1x256xi32>
    %c1_i32_5 = arith.constant 1 : i32
    %23 = vector.broadcast %c1_i32_5 : i32 to vector<1x256xi32>
    %24 = arith.addi %0, %23 : vector<1x256xi32>
    %c256_i32_6 = arith.constant 256 : i32
    %25 = vector.broadcast %c256_i32_6 : i32 to vector<1x256xi32>
    %26 = arith.cmpi slt, %24, %25 : vector<1x256xi32>
    %27 = arith.andi %22, %26 : vector<1x256xi1>
    %c2_i32 = arith.constant 2 : i32
    %28 = vector.broadcast %c2_i32 : i32 to vector<1x256xi32>
    %29 = arith.addi %0, %28 : vector<1x256xi32>
    %c0_i32_7 = arith.constant 0 : i32
    %30 = vector.broadcast %c0_i32_7 : i32 to vector<1x256xi32>
    %31 = arith.cmpi sge, %29, %30 : vector<1x256xi32>
    %c2_i32_8 = arith.constant 2 : i32
    %32 = vector.broadcast %c2_i32_8 : i32 to vector<1x256xi32>
    %33 = arith.addi %0, %32 : vector<1x256xi32>
    %c256_i32_9 = arith.constant 256 : i32
    %34 = vector.broadcast %c256_i32_9 : i32 to vector<1x256xi32>
    %35 = arith.cmpi slt, %33, %34 : vector<1x256xi32>
    %36 = arith.andi %31, %35 : vector<1x256xi1>
    %c0 = arith.constant 0 : index
    %c0_10 = arith.constant 0 : index
    %37 = vector.load %arg2[%c0, %c0_10] : memref<24x21xf32, #tpu.memory_space<vmem>>, vector<24x21xf32>
    %c0_11 = arith.constant 0 : index
    %c0_12 = arith.constant 0 : index
    %38 = vector.load %arg3[%c0_11, %c0_12] : memref<24x1xf32, #tpu.memory_space<vmem>>, vector<24x1xf32>
    %c0_13 = arith.constant 0 : index
    %c0_14 = arith.constant 0 : index
    %39 = vector.load %arg4[%c0_13, %c0_14] : memref<24x85xf32, #tpu.memory_space<vmem>>, vector<24x85xf32>
    %c0_15 = arith.constant 0 : index
    %c0_16 = arith.constant 0 : index
    %40 = vector.load %arg5[%c0_15, %c0_16] : memref<24x1xf32, #tpu.memory_space<vmem>>, vector<24x1xf32>
    %c0_17 = arith.constant 0 : index
    %c0_18 = arith.constant 0 : index
    %41 = vector.load %arg6[%c0_17, %c0_18] : memref<32x1xf32, #tpu.memory_space<vmem>>, vector<8x1xf32>
    %c0_19 = arith.constant 0 : index
    %c0_20 = arith.constant 0 : index
    %42 = vector.load %arg7[%c0_19, %c0_20] : memref<32x1xf32, #tpu.memory_space<vmem>>, vector<8x1xf32>
    %c8 = arith.constant 8 : index
    %c0_21 = arith.constant 0 : index
    %43 = vector.load %arg6[%c8, %c0_21] : memref<32x1xf32, #tpu.memory_space<vmem>>, vector<24x1xf32>
    %c8_22 = arith.constant 8 : index
    %c0_23 = arith.constant 0 : index
    %44 = vector.load %arg7[%c8_22, %c0_23] : memref<32x1xf32, #tpu.memory_space<vmem>>, vector<24x1xf32>
    %c0_24 = arith.constant 0 : index
    %c0_25 = arith.constant 0 : index
    %c0_26 = arith.constant 0 : index
    %45 = vector.load %arg1[%c0_24, %c0_25, %c0_26] : memref<2x21x256xf32, #tpu.memory_space<vmem>>, vector<1x21x256xf32>
    %46 = vector.shape_cast %45 : vector<1x21x256xf32> to vector<21x256xf32>
    %cst = arith.constant dense<0.000000e+00> : vector<24x256xf32>
    %47 = tpu.matmul %37, %46, %cst {dimension_numbers = #tpu.dot_dimension_numbers<[1], [0], [0], [1], [0, 0, 1, 1], [], []>} : vector<24x21xf32>, vector<21x256xf32>, vector<24x256xf32> -> vector<24x256xf32>
    %48 = vector.broadcast %38 : vector<24x1xf32> to vector<24x256xf32>
    %49 = arith.addf %47, %48 : vector<24x256xf32>
    %cst_27 = arith.constant 0.000000e+00 : f32
    %50 = vector.broadcast %cst_27 : f32 to vector<24x256xf32>
    %51 = arith.maximumf %49, %50 : vector<24x256xf32>
    %52 = vector.extract_strided_slice %51 {offsets = [0, 0], sizes = [8, 256], strides = [1, 1]} : vector<24x256xf32> to vector<8x256xf32>
    %53 = vector.extract_strided_slice %51 {offsets = [8, 0], sizes = [8, 256], strides = [1, 1]} : vector<24x256xf32> to vector<8x256xf32>
    %54 = vector.extract_strided_slice %51 {offsets = [16, 0], sizes = [8, 256], strides = [1, 1]} : vector<24x256xf32> to vector<8x256xf32>
    %c1_i32_28 = arith.constant 1 : i32
    %55 = tpu.dynamic_rotate %46 by %c1_i32_28 dim 1 : vector<21x256xf32>, i32 -> vector<21x256xf32>
    %cst_29 = arith.constant 0xFF800000 : f32
    %56 = vector.shape_cast %18 : vector<1x256xi1> to vector<1x256xi1>
    %57 = vector.broadcast %56 : vector<1x256xi1> to vector<21x256xi1>
    %58 = vector.broadcast %cst_29 : f32 to vector<21x256xf32>
    %59 = arith.select %57, %55, %58 : vector<21x256xi1>, vector<21x256xf32>
    %60 = arith.maximumf %59, %46 : vector<21x256xf32>
    %c255_i32 = arith.constant 255 : i32
    %61 = tpu.dynamic_rotate %46 by %c255_i32 dim 1 : vector<21x256xf32>, i32 -> vector<21x256xf32>
    %cst_30 = arith.constant 0xFF800000 : f32
    %62 = vector.shape_cast %27 : vector<1x256xi1> to vector<1x256xi1>
    %63 = vector.broadcast %62 : vector<1x256xi1> to vector<21x256xi1>
    %64 = vector.broadcast %cst_30 : f32 to vector<21x256xf32>
    %65 = arith.select %63, %61, %64 : vector<21x256xi1>, vector<21x256xf32>
    %66 = arith.maximumf %60, %65 : vector<21x256xf32>
    %c1_i32_31 = arith.constant 1 : i32
    %67 = tpu.dynamic_rotate %53 by %c1_i32_31 dim 1 : vector<8x256xf32>, i32 -> vector<8x256xf32>
    %cst_32 = arith.constant 0.000000e+00 : f32
    %68 = vector.shape_cast %18 : vector<1x256xi1> to vector<1x256xi1>
    %69 = vector.broadcast %68 : vector<1x256xi1> to vector<8x256xi1>
    %70 = vector.broadcast %cst_32 : f32 to vector<8x256xf32>
    %71 = arith.select %69, %67, %70 : vector<8x256xi1>, vector<8x256xf32>
    %c255_i32_33 = arith.constant 255 : i32
    %72 = tpu.dynamic_rotate %53 by %c255_i32_33 dim 1 : vector<8x256xf32>, i32 -> vector<8x256xf32>
    %cst_34 = arith.constant 0.000000e+00 : f32
    %73 = vector.shape_cast %27 : vector<1x256xi1> to vector<1x256xi1>
    %74 = vector.broadcast %73 : vector<1x256xi1> to vector<8x256xi1>
    %75 = vector.broadcast %cst_34 : f32 to vector<8x256xf32>
    %76 = arith.select %74, %72, %75 : vector<8x256xi1>, vector<8x256xf32>
    %c2_i32_35 = arith.constant 2 : i32
    %77 = tpu.dynamic_rotate %54 by %c2_i32_35 dim 1 : vector<8x256xf32>, i32 -> vector<8x256xf32>
    %cst_36 = arith.constant 0.000000e+00 : f32
    %78 = vector.shape_cast %9 : vector<1x256xi1> to vector<1x256xi1>
    %79 = vector.broadcast %78 : vector<1x256xi1> to vector<8x256xi1>
    %80 = vector.broadcast %cst_36 : f32 to vector<8x256xf32>
    %81 = arith.select %79, %77, %80 : vector<8x256xi1>, vector<8x256xf32>
    %c1_i32_37 = arith.constant 1 : i32
    %82 = tpu.dynamic_rotate %54 by %c1_i32_37 dim 1 : vector<8x256xf32>, i32 -> vector<8x256xf32>
    %cst_38 = arith.constant 0.000000e+00 : f32
    %83 = vector.shape_cast %18 : vector<1x256xi1> to vector<1x256xi1>
    %84 = vector.broadcast %83 : vector<1x256xi1> to vector<8x256xi1>
    %85 = vector.broadcast %cst_38 : f32 to vector<8x256xf32>
    %86 = arith.select %84, %82, %85 : vector<8x256xi1>, vector<8x256xf32>
    %c255_i32_39 = arith.constant 255 : i32
    %87 = tpu.dynamic_rotate %54 by %c255_i32_39 dim 1 : vector<8x256xf32>, i32 -> vector<8x256xf32>
    %cst_40 = arith.constant 0.000000e+00 : f32
    %88 = vector.shape_cast %27 : vector<1x256xi1> to vector<1x256xi1>
    %89 = vector.broadcast %88 : vector<1x256xi1> to vector<8x256xi1>
    %90 = vector.broadcast %cst_40 : f32 to vector<8x256xf32>
    %91 = arith.select %89, %87, %90 : vector<8x256xi1>, vector<8x256xf32>
    %c254_i32 = arith.constant 254 : i32
    %92 = tpu.dynamic_rotate %54 by %c254_i32 dim 1 : vector<8x256xf32>, i32 -> vector<8x256xf32>
    %cst_41 = arith.constant 0.000000e+00 : f32
    %93 = vector.shape_cast %36 : vector<1x256xi1> to vector<1x256xi1>
    %94 = vector.broadcast %93 : vector<1x256xi1> to vector<8x256xi1>
    %95 = vector.broadcast %cst_41 : f32 to vector<8x256xf32>
    %96 = arith.select %94, %92, %95 : vector<8x256xi1>, vector<8x256xf32>
    %97 = tpu.concatenate %71, %53, %76, %81, %86, %54, %91, %96, %66 in 0 : vector<8x256xf32>, vector<8x256xf32>, vector<8x256xf32>, vector<8x256xf32>, vector<8x256xf32>, vector<8x256xf32>, vector<8x256xf32>, vector<8x256xf32>, vector<21x256xf32> -> vector<85x256xf32>
    %cst_42 = arith.constant dense<0.000000e+00> : vector<24x256xf32>
    %98 = tpu.matmul %39, %97, %cst_42 {dimension_numbers = #tpu.dot_dimension_numbers<[1], [0], [0], [1], [0, 0, 1, 1], [], []>} : vector<24x85xf32>, vector<85x256xf32>, vector<24x256xf32> -> vector<24x256xf32>
    %99 = vector.broadcast %40 : vector<24x1xf32> to vector<24x256xf32>
    %100 = arith.addf %98, %99 : vector<24x256xf32>
    %cst_43 = arith.constant 0.000000e+00 : f32
    %101 = vector.broadcast %cst_43 : f32 to vector<24x256xf32>
    %102 = arith.maximumf %100, %101 : vector<24x256xf32>
    %103 = vector.broadcast %41 : vector<8x1xf32> to vector<8x256xf32>
    %104 = arith.mulf %52, %103 : vector<8x256xf32>
    %105 = vector.broadcast %42 : vector<8x1xf32> to vector<8x256xf32>
    %106 = arith.addf %104, %105 : vector<8x256xf32>
    %c0_44 = arith.constant 0 : index
    %c0_45 = arith.constant 0 : index
    %c0_46 = arith.constant 0 : index
    %107 = vector.load %arg8[%c0_44, %c0_45, %c0_46] : memref<2x32x256xf32, #tpu.memory_space<vmem>>, vector<1x8x256xf32>
    %108 = vector.shape_cast %107 : vector<1x8x256xf32> to vector<8x256xf32>
    %109 = vector.shape_cast %106 : vector<8x256xf32> to vector<1x8x256xf32>
    tpu.vector_store %arg8[%c0_44, %c0_45, %c0_46], %109 {strides = array<i32>} : memref<2x32x256xf32, #tpu.memory_space<vmem>>, vector<1x8x256xf32>,
    %110 = vector.broadcast %43 : vector<24x1xf32> to vector<24x256xf32>
    %111 = arith.mulf %102, %110 : vector<24x256xf32>
    %112 = vector.broadcast %44 : vector<24x1xf32> to vector<24x256xf32>
    %113 = arith.addf %111, %112 : vector<24x256xf32>
    %c0_47 = arith.constant 0 : index
    %c8_48 = arith.constant 8 : index
    %c0_49 = arith.constant 0 : index
    %114 = vector.load %arg8[%c0_47, %c8_48, %c0_49] : memref<2x32x256xf32, #tpu.memory_space<vmem>>, vector<1x24x256xf32>
    %115 = vector.shape_cast %114 : vector<1x24x256xf32> to vector<24x256xf32>
    %116 = vector.shape_cast %113 : vector<24x256xf32> to vector<1x24x256xf32>
    tpu.vector_store %arg8[%c0_47, %c8_48, %c0_49], %116 {strides = array<i32>} : memref<2x32x256xf32, #tpu.memory_space<vmem>>, vector<1x24x256xf32>,
    %c1 = arith.constant 1 : index
    %c0_50 = arith.constant 0 : index
    %c0_51 = arith.constant 0 : index
    %117 = vector.load %arg1[%c1, %c0_50, %c0_51] : memref<2x21x256xf32, #tpu.memory_space<vmem>>, vector<1x21x256xf32>
    %118 = vector.shape_cast %117 : vector<1x21x256xf32> to vector<21x256xf32>
    %cst_52 = arith.constant dense<0.000000e+00> : vector<24x256xf32>
    %119 = tpu.matmul %37, %118, %cst_52 {dimension_numbers = #tpu.dot_dimension_numbers<[1], [0], [0], [1], [0, 0, 1, 1], [], []>} : vector<24x21xf32>, vector<21x256xf32>, vector<24x256xf32> -> vector<24x256xf32>
    %120 = vector.broadcast %38 : vector<24x1xf32> to vector<24x256xf32>
    %121 = arith.addf %119, %120 : vector<24x256xf32>
    %cst_53 = arith.constant 0.000000e+00 : f32
    %122 = vector.broadcast %cst_53 : f32 to vector<24x256xf32>
    %123 = arith.maximumf %121, %122 : vector<24x256xf32>
    %124 = vector.extract_strided_slice %123 {offsets = [0, 0], sizes = [8, 256], strides = [1, 1]} : vector<24x256xf32> to vector<8x256xf32>
    %125 = vector.extract_strided_slice %123 {offsets = [8, 0], sizes = [8, 256], strides = [1, 1]} : vector<24x256xf32> to vector<8x256xf32>
    %126 = vector.extract_strided_slice %123 {offsets = [16, 0], sizes = [8, 256], strides = [1, 1]} : vector<24x256xf32> to vector<8x256xf32>
    %c1_i32_54 = arith.constant 1 : i32
    %127 = tpu.dynamic_rotate %118 by %c1_i32_54 dim 1 : vector<21x256xf32>, i32 -> vector<21x256xf32>
    %cst_55 = arith.constant 0xFF800000 : f32
    %128 = vector.shape_cast %18 : vector<1x256xi1> to vector<1x256xi1>
    %129 = vector.broadcast %128 : vector<1x256xi1> to vector<21x256xi1>
    %130 = vector.broadcast %cst_55 : f32 to vector<21x256xf32>
    %131 = arith.select %129, %127, %130 : vector<21x256xi1>, vector<21x256xf32>
    %132 = arith.maximumf %131, %118 : vector<21x256xf32>
    %c255_i32_56 = arith.constant 255 : i32
    %133 = tpu.dynamic_rotate %118 by %c255_i32_56 dim 1 : vector<21x256xf32>, i32 -> vector<21x256xf32>
    %cst_57 = arith.constant 0xFF800000 : f32
    %134 = vector.shape_cast %27 : vector<1x256xi1> to vector<1x256xi1>
    %135 = vector.broadcast %134 : vector<1x256xi1> to vector<21x256xi1>
    %136 = vector.broadcast %cst_57 : f32 to vector<21x256xf32>
    %137 = arith.select %135, %133, %136 : vector<21x256xi1>, vector<21x256xf32>
    %138 = arith.maximumf %132, %137 : vector<21x256xf32>
    %c1_i32_58 = arith.constant 1 : i32
    %139 = tpu.dynamic_rotate %125 by %c1_i32_58 dim 1 : vector<8x256xf32>, i32 -> vector<8x256xf32>
    %cst_59 = arith.constant 0.000000e+00 : f32
    %140 = vector.shape_cast %18 : vector<1x256xi1> to vector<1x256xi1>
    %141 = vector.broadcast %140 : vector<1x256xi1> to vector<8x256xi1>
    %142 = vector.broadcast %cst_59 : f32 to vector<8x256xf32>
    %143 = arith.select %141, %139, %142 : vector<8x256xi1>, vector<8x256xf32>
    %c255_i32_60 = arith.constant 255 : i32
    %144 = tpu.dynamic_rotate %125 by %c255_i32_60 dim 1 : vector<8x256xf32>, i32 -> vector<8x256xf32>
    %cst_61 = arith.constant 0.000000e+00 : f32
    %145 = vector.shape_cast %27 : vector<1x256xi1> to vector<1x256xi1>
    %146 = vector.broadcast %145 : vector<1x256xi1> to vector<8x256xi1>
    %147 = vector.broadcast %cst_61 : f32 to vector<8x256xf32>
    %148 = arith.select %146, %144, %147 : vector<8x256xi1>, vector<8x256xf32>
    %c2_i32_62 = arith.constant 2 : i32
    %149 = tpu.dynamic_rotate %126 by %c2_i32_62 dim 1 : vector<8x256xf32>, i32 -> vector<8x256xf32>
    %cst_63 = arith.constant 0.000000e+00 : f32
    %150 = vector.shape_cast %9 : vector<1x256xi1> to vector<1x256xi1>
    %151 = vector.broadcast %150 : vector<1x256xi1> to vector<8x256xi1>
    %152 = vector.broadcast %cst_63 : f32 to vector<8x256xf32>
    %153 = arith.select %151, %149, %152 : vector<8x256xi1>, vector<8x256xf32>
    %c1_i32_64 = arith.constant 1 : i32
    %154 = tpu.dynamic_rotate %126 by %c1_i32_64 dim 1 : vector<8x256xf32>, i32 -> vector<8x256xf32>
    %cst_65 = arith.constant 0.000000e+00 : f32
    %155 = vector.shape_cast %18 : vector<1x256xi1> to vector<1x256xi1>
    %156 = vector.broadcast %155 : vector<1x256xi1> to vector<8x256xi1>
    %157 = vector.broadcast %cst_65 : f32 to vector<8x256xf32>
    %158 = arith.select %156, %154, %157 : vector<8x256xi1>, vector<8x256xf32>
    %c255_i32_66 = arith.constant 255 : i32
    %159 = tpu.dynamic_rotate %126 by %c255_i32_66 dim 1 : vector<8x256xf32>, i32 -> vector<8x256xf32>
    %cst_67 = arith.constant 0.000000e+00 : f32
    %160 = vector.shape_cast %27 : vector<1x256xi1> to vector<1x256xi1>
    %161 = vector.broadcast %160 : vector<1x256xi1> to vector<8x256xi1>
    %162 = vector.broadcast %cst_67 : f32 to vector<8x256xf32>
    %163 = arith.select %161, %159, %162 : vector<8x256xi1>, vector<8x256xf32>
    %c254_i32_68 = arith.constant 254 : i32
    %164 = tpu.dynamic_rotate %126 by %c254_i32_68 dim 1 : vector<8x256xf32>, i32 -> vector<8x256xf32>
    %cst_69 = arith.constant 0.000000e+00 : f32
    %165 = vector.shape_cast %36 : vector<1x256xi1> to vector<1x256xi1>
    %166 = vector.broadcast %165 : vector<1x256xi1> to vector<8x256xi1>
    %167 = vector.broadcast %cst_69 : f32 to vector<8x256xf32>
    %168 = arith.select %166, %164, %167 : vector<8x256xi1>, vector<8x256xf32>
    %169 = tpu.concatenate %143, %125, %148, %153, %158, %126, %163, %168, %138 in 0 : vector<8x256xf32>, vector<8x256xf32>, vector<8x256xf32>, vector<8x256xf32>, vector<8x256xf32>, vector<8x256xf32>, vector<8x256xf32>, vector<8x256xf32>, vector<21x256xf32> -> vector<85x256xf32>
    %cst_70 = arith.constant dense<0.000000e+00> : vector<24x256xf32>
    %170 = tpu.matmul %39, %169, %cst_70 {dimension_numbers = #tpu.dot_dimension_numbers<[1], [0], [0], [1], [0, 0, 1, 1], [], []>} : vector<24x85xf32>, vector<85x256xf32>, vector<24x256xf32> -> vector<24x256xf32>
    %171 = vector.broadcast %40 : vector<24x1xf32> to vector<24x256xf32>
    %172 = arith.addf %170, %171 : vector<24x256xf32>
    %cst_71 = arith.constant 0.000000e+00 : f32
    %173 = vector.broadcast %cst_71 : f32 to vector<24x256xf32>
    %174 = arith.maximumf %172, %173 : vector<24x256xf32>
    %175 = vector.broadcast %41 : vector<8x1xf32> to vector<8x256xf32>
    %176 = arith.mulf %124, %175 : vector<8x256xf32>
    %177 = vector.broadcast %42 : vector<8x1xf32> to vector<8x256xf32>
    %178 = arith.addf %176, %177 : vector<8x256xf32>
    %c1_72 = arith.constant 1 : index
    %c0_73 = arith.constant 0 : index
    %c0_74 = arith.constant 0 : index
    %179 = vector.load %arg8[%c1_72, %c0_73, %c0_74] : memref<2x32x256xf32, #tpu.memory_space<vmem>>, vector<1x8x256xf32>
    %180 = vector.shape_cast %179 : vector<1x8x256xf32> to vector<8x256xf32>
    %181 = vector.shape_cast %178 : vector<8x256xf32> to vector<1x8x256xf32>
    tpu.vector_store %arg8[%c1_72, %c0_73, %c0_74], %181 {strides = array<i32>} : memref<2x32x256xf32, #tpu.memory_space<vmem>>, vector<1x8x256xf32>,
    %182 = vector.broadcast %43 : vector<24x1xf32> to vector<24x256xf32>
    %183 = arith.mulf %174, %182 : vector<24x256xf32>
    %184 = vector.broadcast %44 : vector<24x1xf32> to vector<24x256xf32>
    %185 = arith.addf %183, %184 : vector<24x256xf32>
    %c1_75 = arith.constant 1 : index
    %c8_76 = arith.constant 8 : index
    %c0_77 = arith.constant 0 : index
    %186 = vector.load %arg8[%c1_75, %c8_76, %c0_77] : memref<2x32x256xf32, #tpu.memory_space<vmem>>, vector<1x24x256xf32>
    %187 = vector.shape_cast %186 : vector<1x24x256xf32> to vector<24x256xf32>
    %188 = vector.shape_cast %185 : vector<24x256xf32> to vector<1x24x256xf32>
    tpu.vector_store %arg8[%c1_75, %c8_76, %c0_77], %188 {strides = array<i32>} : memref<2x32x256xf32, #tpu.memory_space<vmem>>, vector<1x24x256xf32>,
    return
  }
  func.func @transform_0(%arg0: i32) -> (i32, i32, i32) {
    %c0_i32 = arith.constant 0 : i32
    %c0_i32_0 = arith.constant 0 : i32
    %c0_i32_1 = arith.constant 0 : i32
    return %arg0, %c0_i32, %c0_i32_0 : i32, i32, i32
  }
  func.func @transform_1(%arg0: i32) -> (i32, i32) {
    %c0_i32 = arith.constant 0 : i32
    %c0_i32_0 = arith.constant 0 : i32
    %c0_i32_1 = arith.constant 0 : i32
    return %c0_i32, %c0_i32_0 : i32, i32
  }
  func.func @transform_2(%arg0: i32) -> (i32, i32) {
    %c0_i32 = arith.constant 0 : i32
    %c0_i32_0 = arith.constant 0 : i32
    %c0_i32_1 = arith.constant 0 : i32
    return %c0_i32, %c0_i32_0 : i32, i32
  }
  func.func @transform_3(%arg0: i32) -> (i32, i32) {
    %c0_i32 = arith.constant 0 : i32
    %c0_i32_0 = arith.constant 0 : i32
    %c0_i32_1 = arith.constant 0 : i32
    return %c0_i32, %c0_i32_0 : i32, i32
  }
  func.func @transform_4(%arg0: i32) -> (i32, i32) {
    %c0_i32 = arith.constant 0 : i32
    %c0_i32_0 = arith.constant 0 : i32
    %c0_i32_1 = arith.constant 0 : i32
    return %c0_i32, %c0_i32_0 : i32, i32
  }
  func.func @transform_5(%arg0: i32) -> (i32, i32) {
    %c0_i32 = arith.constant 0 : i32
    %c0_i32_0 = arith.constant 0 : i32
    %c0_i32_1 = arith.constant 0 : i32
    return %c0_i32, %c0_i32_0 : i32, i32
  }
  func.func @transform_6(%arg0: i32) -> (i32, i32) {
    %c0_i32 = arith.constant 0 : i32
    %c0_i32_0 = arith.constant 0 : i32
    %c0_i32_1 = arith.constant 0 : i32
    return %c0_i32, %c0_i32_0 : i32, i32
  }
  func.func @transform_7(%arg0: i32) -> (i32, i32, i32) {
    %c0_i32 = arith.constant 0 : i32
    %c0_i32_0 = arith.constant 0 : i32
    %c0_i32_1 = arith.constant 0 : i32
    return %arg0, %c0_i32, %c0_i32_0 : i32, i32, i32
  }
}

</mosaic_0001>

<bundles_post_ra>
// kernel: inception_block_pallas.2
= control target key start
LH: loop header
LB: loop body
LE: loop exit
PB: predicated region body
PF: predicated region fallthrough
CT: control target
= control target key end

     0   :  { %s1212_s18 = smov 0   ;;  %s1645_s0 = inlined_call_operand.vmem [shape: f32[4,21,256], index: 0, kind: input, shape index: {}]   ;;  %s1646_s1 = inlined_call_operand.vmem [shape: f32[24,21], index: 1, kind: input, shape index: {}]   ;;  %s1647_s2 = inlined_call_operand.vmem [shape: f32[24,1], index: 2, kind: input, shape index: {}]   ;;  %s1648_s3 = inlined_call_operand.vmem [shape: f32[24,85], index: 3, kind: input, shape index: {}]   ;;  %s1649_s4 = inlined_call_operand.vmem [shape: f32[24,1], index: 4, kind: input, shape index: {}]   ;;  %s1650_s5 = inlined_call_operand.vmem [shape: f32[2,64,1], index: 5, kind: output, shape index: {}]  }
   0x1 LB: > { %s1218_s19 = sadd.s32 4294967295, %s1174_s18   ;;  %p1105_p0 = scmp.ge.s32.totalorder %s1174_s18, 1  ;;  %s1174_s18 = sphi %s1212_s18, %s15_s18  }
   0x2   : > { %p189_p1 = scmp.lt.s32.totalorder %s1174_s18, 3 }
   0x4   : > { %p190_p2 = pnand %p1105_p0, %p189_p1 }
   0x5   : > { %s1106_s20 = sshll.u32 (!%p190_p2), %s1218_s19, 1  ;;  %s1178_s8 = smov (!%p190_p2), 1  }
   0x6   : > { %193 = sbr.rel (%p190_p2) target bundleno = 757 (0x2f5), region = 40  ;;  %p219_p3 = scmp.lt.s32.totalorder (!%p190_p2), %s1106_s20, 3 }
   0x7   : > { %s1179_s11 = smov (!%p190_p2), 127   ;;  %s1180_s12 = smov (!%p190_p2), 126  }
   0x8   : > { %s1181_s13 = smov (!%p190_p2), 2   ;;  %p225_p4 = scmp.lt.s32.totalorder (!%p190_p2), %s1218_s19, 1 }
   0xb   : > { %v1176_v0 = vmov 0.0   ;;  %v270_v1 = vld [vmem:[%s1647_s2 + $0x10] sm:$0xff]  ;;  %v1177_v2 = vmov 0   ;;  %s1652_s20 = smov (!%p219_p3, %s1106_s20), 3  ;;  %v269_v3 = vld [vmem:[%s1647_s2 + $0x8] sm:$0xff]  ;;  %vm308_vm0 = vcmask 1044480   ;;  %v230_v22 = vlaneseq }
   0xc   : > { %379 = vmatprep.mubr.f32.mxu1 %v1176_v0  ;;  %769 = vmatprep.mubr.f32.mxu0 %v1176_v0  ;;  %s1151_s25 = smul.u32 48, %s1652_s20  ;;  %v265_v16 = vld [vmem:[%s1646_s1] sm:$0xff]  ;;  %vm298_vm1 = vcmask 171008   ;;  %v266_v17 = vld [vmem:[%s1646_s1 + $0x8] sm:$0xff]  ;;  %v267_v18 = vld [vmem:[%s1646_s1 + $0x10] sm:$0xff]  ;;  %vm547_vm10 = vcmask 695296  }
   0xd   : > { %1166 = vset.pattern.permute.xlu0 %v1177_v2  ;;  %1167 = vset.pattern.permute.xlu1 %v1177_v2  ;;  %v1347_v24 = vand.u32 127, %v230_v22  ;;  %s1654_s19 = smov (!%p225_p4, %s1218_s19), 1  ;;  %vm1037_vm11 = vcmask 7168  }
   0xe   : > { %295 = vperm.xlu0 %1166, %v270_v1   ;;  %s223_s28 = scalar_lea.vmem %s1645_s0, %s1151_s25  ;;  %s1150_s30 = sshll.u32 %s1654_s19, 6 }
   0xf   : > { %v1234_v4 = vld [vmem:[%s223_s28 + $0x28] sm:$0x1f]  ;;  %v1236_v5 = vld [vmem:[%s223_s28 + $0x58] sm:$0x1f]  ;;  %v1238_v6 = vld [vmem:[%s223_s28 + $0x20] sm:$0x1f] }
  0x10   : > { %1110 = vmatprep.subr.msk.mxu1 %vm308_vm0, %v1234_v4  ;;  %1132 = vmatprep.subr.msk.mxu0 %vm308_vm0, %v1236_v5  ;;  %v1244_v7 = vld [vmem:[%s223_s28 + $0x50] sm:$0x1f]  ;;  %v1246_v8 = vld [vmem:[%s223_s28 + $0x18] sm:$0xff]  ;;  %v1248_v9 = vld [vmem:[%s223_s28 + $0x48] sm:$0xff]  ;;  %v1350_v25 = vadd.s32 4294967295, %v1347_v24  ;;  %vm416_vm2 = vcmp.lt.s32.totalorder %v1347_v24, 1 }
  0x11   : > { %1111 = vmatpush1.msk.msra.mxu1 %vm308_vm0, %v1238_v6  ;;  %1133 = vmatpush1.msk.msra.mxu0 %vm308_vm0, %v1244_v7  ;;  %v1254_v10 = vld [vmem:[%s223_s28 + $0x10] sm:$0xff]  ;;  %v1256_v11 = vld [vmem:[%s223_s28 + $0x40] sm:$0xff]  ;;  %v1258_v12 = vld [vmem:[%s223_s28 + $0x8] sm:$0xff]  ;;  %v1354_v28 = vadd.s32 128, %v1347_v24  ;;  %vm451_vm4 = vcmp.lt.s32.totalorder %v1347_v24, 127  ;;  %vm523_vm6 = vcmp.lt.s32.totalorder %v1347_v24, 126 }
  0x12   : > { %290 = vperm.xlu0 %1166, %v269_v3   ;;  %343 = vmatprep.subr.mxu1 %v1246_v8  ;;  %v1262_v13 = vld [vmem:[%s223_s28 + $0x38] sm:$0xff]  ;;  %v1264_v14 = vld [vmem:[%s223_s28] sm:$0xff]  ;;  %v1266_v15 = vld [vmem:[%s223_s28 + $0x30] sm:$0xff]  ;;  %vm243_vm3 = vcmp.ge.s32.totalorder %v1350_v25, 0  ;;  %vm494_vm8 = vcmp.lt.s32.totalorder %v1347_v24, 2 }
  0x13   : > { %733 = vmatprep.subr.mxu0 %v1248_v9  ;;  %344 = vmatpush1.msra.mxu1 %v1254_v10  ;;  %v1362_v31 = vadd.s32 1, %v1354_v28 }
  0x14   : > { %734 = vmatpush1.msra.mxu0 %v1256_v11  ;;  %345 = vmatprep.subr.mxu1 %v1258_v12 }
  0x15   : > { %735 = vmatprep.subr.mxu0 %v1262_v13  ;;  %346 = vmatpush1.msra.mxu1 %v1264_v14  ;;  %vm254_vm5 = vcmp.lt.s32.totalorder %v1362_v31, 256 }
  0x16   : > { %736 = vmatpush1.msra.mxu0 %v1266_v15  ;;  %1112 = vmatmul.mubr.msk.f32.vlgmr.msra.gmra.mxu1 %vm298_vm1, %v265_v16 }
  0x17   : > { %1134 = vmatmul.mubr.msk.f32.vlgmr.msra.gmra.mxu0 %vm298_vm1, %v265_v16  ;;  %385 = vmatprep.mubr.f32.mxu1 %v1176_v0 }
  0x18   : > { %775 = vmatprep.mubr.f32.mxu0 %v1176_v0  ;;  %408 = vrot.lane.b32.xlu1 %v1238_v6, %s1178_s8 }
  0x19   : > { %798 = vrot.lane.b32.xlu0 %v1244_v7, %s1178_s8 }
  0x1a   : > { %1113 = vmatmul.mubr.msk.f32.gmra.mxu1 %vm298_vm1, %v266_v17 }
  0x1b   : > { %1135 = vmatmul.mubr.msk.f32.gmra.mxu0 %vm298_vm1, %v266_v17  ;;  %391 = vmatprep.mubr.f32.mxu1 %v1176_v0 }
  0x1c   : > { %781 = vmatprep.mubr.f32.mxu0 %v1176_v0  ;;  %414 = vrot.lane.b32.xlu1 %v1234_v4, %s1178_s8 }
  0x1d   : > { %443 = vrot.lane.b32.xlu0 %v1238_v6, %s1179_s11 }
  0x1e   : > { %1114 = vmatmul.mubr.msk.f32.gmra.mxu1 %vm298_vm1, %v267_v18 }
  0x1f   : > { %1136 = vmatmul.mubr.msk.f32.gmra.mxu0 %vm298_vm1, %v267_v18  ;;  %627 = vmatprep.mubr.f32.mxu1 %v1176_v0 }
  0x20   : > { %972 = vmatprep.mubr.f32.mxu0 %v1176_v0  ;;  %804 = vrot.lane.b32.xlu1 %v1236_v5, %s1178_s8 }
  0x21   : > { %828 = vrot.lane.b32.xlu0 %v1244_v7, %s1179_s11 }
  0x24   : > { %449 = vrot.lane.b32.xlu1 %v1234_v4, %s1179_s11 }
  0x25   : > { %406 = vrot.lane.b32.xlu0 %v1254_v10, %s1178_s8 }
  0x28   : > { %834 = vrot.lane.b32.xlu1 %v1236_v5, %s1179_s11 }
  0x29   : > { %796 = vrot.lane.b32.xlu0 %v1256_v11, %s1178_s8 }
  0x2c   : > { %412 = vrot.lane.b32.xlu1 %v1246_v8, %s1178_s8 }
  0x2d   : > { %441 = vrot.lane.b32.xlu0 %v1254_v10, %s1179_s11 }
  0x30   : > { %802 = vrot.lane.b32.xlu1 %v1248_v9, %s1178_s8 }
  0x31   : > { %826 = vrot.lane.b32.xlu0 %v1256_v11, %s1179_s11 }
  0x34   : > { %447 = vrot.lane.b32.xlu1 %v1246_v8, %s1179_s11 }
  0x35   : > { %404 = vrot.lane.b32.xlu0 %v1264_v14, %s1178_s8 }
  0x38   : > { %832 = vrot.lane.b32.xlu1 %v1248_v9, %s1179_s11 }
  0x39   : > { %794 = vrot.lane.b32.xlu0 %v1266_v15, %s1178_s8 }
  0x3c   : > { %410 = vrot.lane.b32.xlu1 %v1258_v12, %s1178_s8 }
  0x3d   : > { %439 = vrot.lane.b32.xlu0 %v1264_v14, %s1179_s11 }
  0x40   : > { %800 = vrot.lane.b32.xlu1 %v1262_v13, %s1178_s8 }
  0x41   : > { %824 = vrot.lane.b32.xlu0 %v1266_v15, %s1179_s11 }
  0x44   : > { %445 = vrot.lane.b32.xlu1 %v1258_v12, %s1179_s11 }
  0x48   : > { %830 = vrot.lane.b32.xlu1 %v1262_v13, %s1179_s11 }
  0x89   : > { %v1343_v19 = vpop.permute.xlu0 %295 }
  0x8a   : > { %v409_v21 = vpop.permute.xlu1 %408 }
  0x8d   : > { %v1345_v20 = vpop.permute.xlu0 %290 }
  0x8e   : > { %v415_v26 = vpop.permute.xlu1 %414 }
  0x8f   : > { %v422_v29 = vsel %vm416_vm2, %v415_v26, %v409_v21  ;;  %v419_v32 = vsel %vm416_vm2, %v409_v21, %v415_v26 }
  0x90   : > { %v431_v30 = vsel %vm243_vm3, %v422_v29, -inf  ;;  %v438_v37 = vmax.f32 %v419_v32, %v1234_v4 }
  0x91   : > { %v799_v23 = vpop.permute.xlu0 %798  ;;  %v437_v36 = vmax.f32 %v431_v30, %v1238_v6 }
  0x92   : > { %v805_v33 = vpop.permute.xlu1 %804 }
  0x93   : > { %v811_v35 = vsel %vm416_vm2, %v805_v33, %v799_v23  ;;  %v808_v39 = vsel %vm416_vm2, %v799_v23, %v805_v33 }
  0x94   : > { %v816_v38 = vsel %vm243_vm3, %v811_v35, -inf  ;;  %v823_v47 = vmax.f32 %v808_v39, %v1236_v5 }
  0x95   : > { %v444_v27 = vpop.permute.xlu0 %443  ;;  %v822_v44 = vmax.f32 %v816_v38, %v1244_v7 }
  0x96   : > { %v450_v40 = vpop.permute.xlu1 %449 }
  0x97   : > { %v454_v42 = vsel %vm451_vm4, %v444_v27, %v450_v40  ;;  %v457_v43 = vsel %vm451_vm4, %v450_v40, %v444_v27 }
  0x98   : > { %v467_v45 = vsel %vm254_vm5, %v457_v43, -inf  ;;  %v472_v46 = vmax.f32 %v437_v36, %v454_v42 }
  0x99   : > { %v829_v34 = vpop.permute.xlu0 %828  ;;  %v473_v48 = vmax.f32 %v438_v37, %v467_v45 }
  0x9a   : > { %v835_v49 = vpop.permute.xlu1 %834 }
  0x9b   : > { %1115 = vmatprep.subr.msk.mxu1 %vm308_vm0, %v473_v48  ;;  %v838_v51 = vsel %vm451_vm4, %v829_v34, %v835_v49  ;;  %v841_v52 = vsel %vm451_vm4, %v835_v49, %v829_v34 }
  0x9c   : > { %1116 = vmatpush1.msk.msra.mxu1 %vm308_vm0, %v472_v46  ;;  %v847_v53 = vsel %vm254_vm5, %v841_v52, -inf  ;;  %v852_v54 = vmax.f32 %v822_v44, %v838_v51 }
  0x9d   : > { %v407_v41 = vpop.permute.xlu0 %406  ;;  %v853_v55 = vmax.f32 %v823_v47, %v847_v53 }
  0x9e   : > { %v413_v56 = vpop.permute.xlu1 %412 }
  0x9f   : > { %v421_v58 = vsel %vm416_vm2, %v413_v56, %v407_v41  ;;  %1137 = vmatprep.subr.msk.mxu0 %vm308_vm0, %v853_v55  ;;  %v418_v60 = vsel %vm416_vm2, %v407_v41, %v413_v56 }
  0xa0   : > { %1138 = vmatpush1.msk.msra.mxu0 %vm308_vm0, %v852_v54  ;;  %v429_v59 = vsel %vm243_vm3, %v421_v58, -inf  ;;  %v436_v2 = vmax.f32 %v418_v60, %v1246_v8 }
  0xa1   : > { %v797_v50 = vpop.permute.xlu0 %796  ;;  %v435_v1 = vmax.f32 %v429_v59, %v1254_v10 }
  0xa2   : > { %v803_v61 = vpop.permute.xlu1 %802 }
  0xa3   : > { %v810_v63 = vsel %vm416_vm2, %v803_v61, %v797_v50  ;;  %v807_v4 = vsel %vm416_vm2, %v797_v50, %v803_v61 }
  0xa4   : > { %v814_v3 = vsel %vm243_vm3, %v810_v63, -inf  ;;  %v821_v18 = vmax.f32 %v807_v4, %v1248_v9 }
  0xa5   : > { %v442_v57 = vpop.permute.xlu0 %441  ;;  %v820_v17 = vmax.f32 %v814_v3, %v1256_v11 }
  0xa6   : > { %v448_v5 = vpop.permute.xlu1 %447 }
  0xa7   : > { %v453_v7 = vsel %vm451_vm4, %v442_v57, %v448_v5  ;;  %v456_v16 = vsel %vm451_vm4, %v448_v5, %v442_v57 }
  0xa8   : > { %v465_v10 = vsel %vm254_vm5, %v456_v16, -inf  ;;  %v470_v8 = vmax.f32 %v435_v1, %v453_v7 }
  0xa9   : > { %v827_v62 = vpop.permute.xlu0 %826  ;;  %v471_v21 = vmax.f32 %v436_v2, %v465_v10 }
  0xaa   : > { %v833_v22 = vpop.permute.xlu1 %832 }
  0xab   : > { %v837_v23 = vsel %vm451_vm4, %v827_v62, %v833_v22  ;;  %v840_v26 = vsel %vm451_vm4, %v833_v22, %v827_v62  ;;  %575 = vmatprep.subr.mxu1 %v471_v21 }
  0xac   : > { %v845_v27 = vsel %vm254_vm5, %v840_v26, -inf  ;;  %v850_v29 = vmax.f32 %v820_v17, %v837_v23  ;;  %576 = vmatpush1.msra.mxu1 %v470_v8 }
  0xad   : > { %v405_v6 = vpop.permute.xlu0 %404  ;;  %v851_v30 = vmax.f32 %v821_v18, %v845_v27  ;;  %v274_v27 = vld [vmem:[%s1649_s4] sm:$0xff] }
  0xae   : > { %v411_v32 = vpop.permute.xlu1 %410 }
  0xaf   : > { %v420_v9 = vsel %vm416_vm2, %v411_v32, %v405_v6  ;;  %920 = vmatprep.subr.mxu0 %v851_v30  ;;  %v417_v34 = vsel %vm416_vm2, %v405_v6, %v411_v32 }
  0xb0   : > { %921 = vmatpush1.msra.mxu0 %v850_v29  ;;  %v427_v33 = vsel %vm243_vm3, %v420_v9, -inf  ;;  %v434_v39 = vmax.f32 %v417_v34, %v1258_v12  ;;  %v275_v29 = vld [vmem:[%s1649_s4 + $0x8] sm:$0xff] }
  0xb1   : > { %v795_v11 = vpop.permute.xlu0 %794  ;;  %v433_v38 = vmax.f32 %v427_v33, %v1264_v14  ;;  %v258_v33 = vadd.s32 2, %v1354_v28 }
  0xb2   : > { %v801_v35 = vpop.permute.xlu1 %800 }
  0xb3   : > { %v809_v37 = vsel %vm416_vm2, %v801_v35, %v795_v11  ;;  %v806_v41 = vsel %vm416_vm2, %v795_v11, %v801_v35  ;;  %v276_v11 = vld [vmem:[%s1649_s4 + $0x10] sm:$0xff]  ;;  %vm262_vm7 = vcmp.lt.s32.totalorder %v258_v33, 256 }
  0xb4   : > { %v812_v40 = vsel %vm243_vm3, %v809_v37, -inf  ;;  %v819_v47 = vmax.f32 %v806_v41, %v1262_v13 }
  0xb5   : > { %v440_v36 = vpop.permute.xlu0 %439  ;;  %v818_v45 = vmax.f32 %v812_v40, %v1266_v15 }
  0xb6   : > { %v446_v42 = vpop.permute.xlu1 %445 }
  0xb7   : > { %v452_v43 = vsel %vm451_vm4, %v440_v36, %v446_v42  ;;  %v455_v44 = vsel %vm451_vm4, %v446_v42, %v440_v36 }
  0xb8   : > { %v463_v14 = vsel %vm254_vm5, %v455_v44, -inf  ;;  %v468_v46 = vmax.f32 %v433_v38, %v452_v43 }
  0xb9   : > { %v825_v12 = vpop.permute.xlu0 %824  ;;  %v469_v48 = vmax.f32 %v434_v39, %v463_v14 }
  0xba   : > { %v831_v49 = vpop.permute.xlu1 %830 }
  0xbb   : > { %v836_v50 = vsel %vm451_vm4, %v825_v12, %v831_v49  ;;  %v839_v51 = vsel %vm451_vm4, %v831_v49, %v825_v12  ;;  %577 = vmatprep.subr.mxu1 %v469_v48 }
  0xbc   : > { %v843_v52 = vsel %vm254_vm5, %v839_v51, -inf  ;;  %v848_v15 = vmax.f32 %v818_v45, %v836_v50  ;;  %578 = vmatpush1.msra.mxu1 %v468_v46 }
  0xbd   : > { %v849_v53 = vmax.f32 %v819_v47, %v843_v52 }
  0xbf   : > { %922 = vmatprep.subr.mxu0 %v849_v53  ;;  %v233_v53 = vadd.s32 4294967294, %v1347_v24  ;;  %v273_v24 = vld [vmem:[%s1648_s3 + $0x10] sm:$0xff] }
  0xc0   : > { %923 = vmatpush1.msra.mxu0 %v848_v15 }
  0xc1   : > { %vm235_vm9 = vcmp.ge.s32.totalorder %v233_v53, 0 }
  0xd6   : > { %v1452_v13 = vpop.f32.mrf.mxu1 }
  0xd7   : > { %v1450_v54 = vpop.f32.mrf.mxu0 }
  0xd8   : > { %v1454_v55 = vpop.f32.mrf.mxu1 }
  0xd9   : > { %v1456_v56 = vpop.f32.mrf.mxu0 }
  0xda   : > { %v387_v57 = vpop.f32.mrf.mxu1 }
  0xdb   : > { %v777_v58 = vpop.f32.mrf.mxu0  ;;  %v388_v59 = vadd.f32 %v387_v57, %v1345_v20 }
  0xdc   : > { %v389_v60 = vpop.f32.mrf.mxu1  ;;  %v778_v63 = vadd.f32 %v777_v58, %v1345_v20 }
  0xdd   : > { %v779_v61 = vpop.f32.mrf.mxu0  ;;  %v1459_v62 = vmax.f32 %v388_v59, 0.0  ;;  %v390_v1 = vadd.f32 %v389_v60, %v1345_v20 }
  0xde   : > { %v393_v2 = vpop.f32.mrf.mxu1  ;;  %v780_v4 = vadd.f32 %v779_v61, %v1345_v20  ;;  %v1468_v7 = vmax.f32 %v778_v63, 0.0 }
  0xdf   : > { %v1463_v3 = vmax.f32 %v390_v1, 0.0  ;;  %482 = vrot.lane.b32.xlu0 %v1459_v62, %s1179_s11  ;;  %v783_v5 = vpop.f32.mrf.mxu0  ;;  %v394_v16 = vadd.f32 %v393_v2, %v1343_v19 }
  0xe0   : > { %v395_v6 = vpop.f32.mrf.mxu1  ;;  %v1473_v17 = vmax.f32 %v780_v4, 0.0  ;;  %v784_v18 = vadd.f32 %v783_v5, %v1343_v19 }
  0xe1   : > { %484 = vrot.lane.b32.xlu1 %v1463_v3, %s1179_s11  ;;  %v396_v10 = vadd.f32 %v395_v6, %v1343_v19  ;;  %v785_v20 = vpop.f32.mrf.mxu0  ;;  %v1478_v8 = vmax.f32 %v394_v16, 0.0 }
  0xe2   : > { %v786_v22 = vadd.f32 %v785_v20, %v1343_v19  ;;  %v1485_v23 = vmax.f32 %v784_v18, 0.0  ;;  %v268_v19 = vld [vmem:[%s1647_s2] sm:$0xff] }
  0xe3   : > { %862 = vrot.lane.b32.xlu0 %v1468_v7, %s1179_s11  ;;  %v403_v21 = vmax.f32 %v396_v10, 0.0 }
  0xe4   : > { %v793_v26 = vmax.f32 %v786_v22, 0.0 }
  0xe5   : > { %864 = vrot.lane.b32.xlu1 %v1473_v17, %s1179_s11 }
  0xe7   : > { %519 = vrot.lane.b32.xlu0 %v1478_v8, %s1180_s12 }
  0xe9   : > { %521 = vrot.lane.b32.xlu1 %v403_v21, %s1180_s12 }
  0xeb   : > { %894 = vrot.lane.b32.xlu0 %v1485_v23, %s1180_s12 }
  0xed   : > { %896 = vrot.lane.b32.xlu1 %v793_v26, %s1180_s12 }
  0xef   : > { %511 = vrot.lane.b32.xlu0 %v1478_v8, %s1179_s11 }
  0xf1   : > { %513 = vrot.lane.b32.xlu1 %v403_v21, %s1179_s11 }
  0xf3   : > { %886 = vrot.lane.b32.xlu0 %v1485_v23, %s1179_s11 }
  0xf5   : > { %888 = vrot.lane.b32.xlu1 %v793_v26, %s1179_s11 }
  0xf7   : > { %503 = vrot.lane.b32.xlu0 %v1478_v8, %s1178_s8 }
  0xf9   : > { %505 = vrot.lane.b32.xlu1 %v403_v21, %s1178_s8 }
  0xfb   : > { %878 = vrot.lane.b32.xlu0 %v1485_v23, %s1178_s8 }
  0xfd   : > { %880 = vrot.lane.b32.xlu1 %v793_v26, %s1178_s8 }
  0xff   : > { %490 = vrot.lane.b32.xlu0 %v1478_v8, %s1181_s13 }
 0x101   : > { %492 = vrot.lane.b32.xlu1 %v403_v21, %s1181_s13 }
 0x103   : > { %870 = vrot.lane.b32.xlu0 %v1485_v23, %s1181_s13 }
 0x105   : > { %872 = vrot.lane.b32.xlu1 %v793_v26, %s1181_s13 }
 0x107   : > { %474 = vrot.lane.b32.xlu0 %v1459_v62, %s1178_s8 }
 0x109   : > { %476 = vrot.lane.b32.xlu1 %v1463_v3, %s1178_s8 }
 0x10b   : > { %854 = vrot.lane.b32.xlu0 %v1468_v7, %s1178_s8 }
 0x10d   : > { %856 = vrot.lane.b32.xlu1 %v1473_v17, %s1178_s8  ;;  %s1620_s8 = scalar_lea.vmem %s1650_s5, %s1150_s30 }
 0x10f   : > { %285 = vperm.xlu0 %1166, %v268_v19  }
 0x111   : > { %534 = vperm.xlu1 %1167, %v274_v27  }
 0x113   : > { %539 = vperm.xlu0 %1166, %v275_v29  }
 0x115   : > { %544 = vperm.xlu1 %1167, %v276_v11  }
 0x151   : > { %v483_v30 = vpop.permute.xlu0 %482 }
 0x153   : > { %v485_v32 = vpop.permute.xlu1 %484 }
 0x154   : > { %v487_v2 = vsel %vm451_vm4, %v485_v32, %v483_v30  ;;  %v486_v4 = vsel %vm451_vm4, %v483_v30, %v485_v32 }
 0x155   : > { %v1522_v9 = vpop.permute.xlu0 %862 }
 0x157   : > { %v1525_v34 = vpop.permute.xlu1 %864 }
 0x158   : > { %v867_v20 = vsel %vm451_vm4, %v1525_v34, %v1522_v9 }
 0x159   : > { %v520_v35 = vpop.permute.xlu0 %519 }
 0x15b   : > { %v522_v36 = vpop.permute.xlu1 %521 }
 0x15c   : > { %v524_v37 = vsel %vm523_vm6, %v520_v35, %v522_v36  ;;  %v525_v38 = vsel %vm523_vm6, %v522_v36, %v520_v35 }
 0x15d   : > { %1117 = vmatprep.subr.msk.mxu1 %vm262_vm7, %v525_v38  ;;  %v895_v39 = vpop.permute.xlu0 %894 }
 0x15e   : > { %580 = vmatpush1.msra.mxu1 %v524_v37 }
 0x15f   : > { %v897_v40 = vpop.permute.xlu1 %896 }
 0x160   : > { %v898_v41 = vsel %vm523_vm6, %v895_v39, %v897_v40  ;;  %v899_v42 = vsel %vm523_vm6, %v897_v40, %v895_v39 }
 0x161   : > { %1139 = vmatprep.subr.msk.mxu0 %vm262_vm7, %v899_v42  ;;  %v512_v43 = vpop.permute.xlu0 %511 }
 0x162   : > { %925 = vmatpush1.msra.mxu0 %v898_v41 }
 0x163   : > { %v514_v44 = vpop.permute.xlu1 %513 }
 0x164   : > { %v515_v28 = vsel %vm451_vm4, %v512_v43, %v514_v44  ;;  %v516_v45 = vsel %vm451_vm4, %v514_v44, %v512_v43 }
 0x165   : > { %1118 = vmatprep.subr.msk.mxu1 %vm254_vm5, %v516_v45  ;;  %v887_v14 = vpop.permute.xlu0 %886 }
 0x166   : > { %582 = vmatpush1.msra.mxu1 %v515_v28 }
 0x167   : > { %v889_v46 = vpop.permute.xlu1 %888  ;;  %583 = vmatprep.subr.mxu1 %v403_v21 }
 0x168   : > { %v890_v12 = vsel %vm451_vm4, %v887_v14, %v889_v46  ;;  %v891_v47 = vsel %vm451_vm4, %v889_v46, %v887_v14  ;;  %584 = vmatpush1.msra.mxu1 %v1478_v8  ;;  %v866_v8 = vsel %vm451_vm4, %v1522_v9, %v1525_v34 }
 0x169   : > { %1140 = vmatprep.subr.msk.mxu0 %vm254_vm5, %v891_v47  ;;  %v504_v48 = vpop.permute.xlu0 %503 }
 0x16a   : > { %927 = vmatpush1.msra.mxu0 %v890_v12 }
 0x16b   : > { %v506_v49 = vpop.permute.xlu1 %505  ;;  %928 = vmatprep.subr.mxu0 %v793_v26 }
 0x16c   : > { %v508_v50 = vsel %vm416_vm2, %v506_v49, %v504_v48  ;;  %929 = vmatpush1.msra.mxu0 %v1485_v23  ;;  %v507_v51 = vsel %vm416_vm2, %v504_v48, %v506_v49 }
 0x16d   : > { %585 = vmatprep.subr.mxu1 %v507_v51  ;;  %v879_v52 = vpop.permute.xlu0 %878 }
 0x16e   : > { %1119 = vmatpush1.msk.msra.mxu1 %vm243_vm3, %v508_v50 }
 0x16f   : > { %v881_v15 = vpop.permute.xlu1 %880 }
 0x170   : > { %v883_v57 = vsel %vm416_vm2, %v881_v15, %v879_v52  ;;  %v882_v58 = vsel %vm416_vm2, %v879_v52, %v881_v15 }
 0x171   : > { %930 = vmatprep.subr.mxu0 %v882_v58  ;;  %v491_v59 = vpop.permute.xlu0 %490 }
 0x172   : > { %1141 = vmatpush1.msk.msra.mxu0 %vm243_vm3, %v883_v57 }
 0x173   : > { %v493_v60 = vpop.permute.xlu1 %492 }
 0x174   : > { %v496_v61 = vsel %vm494_vm8, %v493_v60, %v491_v59  ;;  %v495_v63 = vsel %vm494_vm8, %v491_v59, %v493_v60 }
 0x175   : > { %587 = vmatprep.subr.mxu1 %v495_v63  ;;  %v871_v1 = vpop.permute.xlu0 %870 }
 0x176   : > { %1120 = vmatpush1.msk.msra.mxu1 %vm235_vm9, %v496_v61 }
 0x177   : > { %v873_v5 = vpop.permute.xlu1 %872  ;;  %1121 = vmatprep.subr.msk.mxu1 %vm254_vm5, %v487_v2 }
 0x178   : > { %v875_v6 = vsel %vm494_vm8, %v873_v5, %v871_v1  ;;  %590 = vmatpush1.msra.mxu1 %v486_v4  ;;  %v874_v16 = vsel %vm494_vm8, %v871_v1, %v873_v5 }
 0x179   : > { %591 = vmatprep.subr.mxu1 %v1463_v3  ;;  %932 = vmatprep.subr.mxu0 %v874_v16  ;;  %v475_v10 = vpop.permute.xlu0 %474 }
 0x17a   : > { %592 = vmatpush1.msra.mxu1 %v1459_v62  ;;  %1142 = vmatpush1.msk.msra.mxu0 %vm235_vm9, %v875_v6  ;;  %v271_v62 = vld [vmem:[%s1648_s3] sm:$0xff] }
 0x17b   : > { %v477_v18 = vpop.permute.xlu1 %476  ;;  %1143 = vmatprep.subr.msk.mxu0 %vm254_vm5, %v867_v20 }
 0x17c   : > { %v479_v3 = vsel %vm416_vm2, %v477_v18, %v475_v10  ;;  %935 = vmatpush1.msra.mxu0 %v866_v8  ;;  %v478_v21 = vsel %vm416_vm2, %v475_v10, %v477_v18 }
 0x17d   : > { %593 = vmatprep.subr.mxu1 %v478_v21  ;;  %936 = vmatprep.subr.mxu0 %v1473_v17  ;;  %v855_v31 = vpop.permute.xlu0 %854  ;;  %v272_v17 = vld [vmem:[%s1648_s3 + $0x8] sm:$0xff] }
 0x17e   : > { %1122 = vmatpush1.msk.msra.mxu1 %vm243_vm3, %v479_v3  ;;  %937 = vmatpush1.msra.mxu0 %v1468_v7 }
 0x17f   : > { %v857_v22 = vpop.permute.xlu1 %856  ;;  %1123 = vmatmul.mubr.msk.f32.vlgmr.msra.gmra.mxu1 %vm547_vm10, %v271_v62 }
 0x180   : > { %v859_v23 = vsel %vm416_vm2, %v857_v22, %v855_v31  ;;  %v858_v26 = vsel %vm416_vm2, %v855_v31, %v857_v22  ;;  %633 = vmatprep.mubr.f32.mxu1 %v1176_v0 }
 0x181   : > { %938 = vmatprep.subr.mxu0 %v858_v26 }
 0x182   : > { %1144 = vmatpush1.msk.msra.mxu0 %vm243_vm3, %v859_v23 }
 0x183   : > { %1124 = vmatmul.mubr.msk.f32.gmra.mxu1 %vm547_vm10, %v272_v17  ;;  %1145 = vmatmul.mubr.msk.f32.vlgmr.msra.gmra.mxu0 %vm547_vm10, %v271_v62 }
 0x184   : > { %639 = vmatprep.mubr.f32.mxu1 %v1176_v0  ;;  %978 = vmatprep.mubr.f32.mxu0 %v1176_v0 }
 0x187   : > { %1125 = vmatmul.mubr.msk.f32.gmra.mxu1 %vm547_vm10, %v273_v24  ;;  %1146 = vmatmul.mubr.msk.f32.gmra.mxu0 %vm547_vm10, %v272_v17 }
 0x188   : > { %984 = vmatprep.mubr.f32.mxu0 %v1176_v0 }
 0x18a   : > { %v286_v25 = vpop.permute.xlu0 %285 }
 0x18b   : > { %1147 = vmatmul.mubr.msk.f32.gmra.mxu0 %vm547_vm10, %v273_v24  ;;  %v382_v7 = vadd.f32 %v1452_v13, %v286_v25  ;;  %v384_v19 = vadd.f32 %v1454_v55, %v286_v25  ;;  %v772_v11 = vadd.f32 %v1450_v54, %v286_v25  ;;  %v774_v30 = vadd.f32 %v1456_v56, %v286_v25 }
 0x18c   : > { %v535_v38 = vpop.permute.xlu1 %534 }
 0x18d   : > { %v398_v27 = vmax.f32 %v382_v7, 0.0  ;;  %v399_v29 = vmax.f32 %v384_v19, 0.0  ;;  %v788_v34 = vmax.f32 %v772_v11, 0.0  ;;  %v789_v35 = vmax.f32 %v774_v30, 0.0 }
 0x18e   : > { %v540_v56 = vpop.permute.xlu0 %539 }
 0x18f   : > { %v652_v32 = vadd.f32 %v399_v29, %v398_v27  ;;  %v668_v9 = vmul.f32 %v398_v27, %v398_v27  ;;  %v669_v33 = vmul.f32 %v399_v29, %v399_v29  ;;  %v997_v36 = vadd.f32 %v789_v35, %v788_v34 }
 0x190   : > { %v1013_v13 = vmul.f32 %v788_v34, %v788_v34  ;;  %v1014_v37 = vmul.f32 %v789_v35, %v789_v35  ;;  %v1614_v54 = vpop.permute.xlu1 %544 }
 0x191   : > { %653 = vadd.xlane.f32.xlu0 %v652_v32  ;;  %v670_v0 = vadd.f32 %v669_v33, %v668_v9 }
 0x192   : > { %v1015_v55 = vadd.f32 %v1014_v37, %v1013_v13 }
 0x193   : > { %671 = vadd.xlane.f32.xlu1 %v670_v0 }
 0x197   : > { %998 = vadd.xlane.f32.xlu1 %v997_v36 }
 0x19b   : > { %1016 = vadd.xlane.f32.xlu1 %v1015_v55 }
 0x21a   : > { %v654_v40 = vpop.xlane.xlu0 %653 }
 0x21c   : > { %v672_v39 = vpop.xlane.xlu1 %671 }
 0x220   : > { %v999_v41 = vpop.xlane.xlu1 %998 }
 0x221   : > { %v1009_v42 = vadd.f32 %v999_v41, %v654_v40 }
 0x223   : > { %1038 = vst.msk [vmem:[%s1620_s8] sm:$0xff] %vm1037_vm11, %v1009_v42 }
 0x224   : > { %v1017_v43 = vpop.xlane.xlu1 %1016 }
 0x225   : > { %v1033_v44 = vadd.f32 %v1017_v43, %v672_v39 }
 0x227   : > { %1042 = vst.msk [vmem:[%s1620_s8 + $0x20] sm:$0xff] %vm1037_vm11, %v1033_v44 }
 0x23f   : > { %v629_v28 = vpop.f32.mrf.mxu1 }
 0x240   : > { %v630_v45 = vadd.f32 %v629_v28, %v535_v38 }
 0x241   : > { %v631_v14 = vpop.f32.mrf.mxu1 }
 0x242   : > { %v632_v46 = vadd.f32 %v631_v14, %v535_v38  ;;  %v646_v12 = vmax.f32 %v630_v45, 0.0 }
 0x243   : > { %v635_v47 = vpop.f32.mrf.mxu1  ;;  %v974_v48 = vpop.f32.mrf.mxu0 }
 0x244   : > { %v647_v49 = vmax.f32 %v632_v46, 0.0  ;;  %v975_v50 = vadd.f32 %v974_v48, %v535_v38  ;;  %v636_v59 = vadd.f32 %v635_v47, %v540_v56  ;;  %v673_v4 = vmul.f32 %v646_v12, %v646_v12 }
 0x245   : > { %v637_v51 = vpop.f32.mrf.mxu1  ;;  %v976_v52 = vpop.f32.mrf.mxu0 }
 0x246   : > { %v638_v15 = vadd.f32 %v637_v51, %v540_v56  ;;  %v977_v53 = vadd.f32 %v976_v52, %v535_v38  ;;  %v655_v58 = vadd.f32 %v647_v49, %v646_v12  ;;  %v991_v60 = vmax.f32 %v975_v50, 0.0 }
 0x247   : > { %v980_v57 = vpop.f32.mrf.mxu0  ;;  %v674_v5 = vmul.f32 %v647_v49, %v647_v49  ;;  %v641_v10 = vpop.f32.mrf.mxu1  ;;  %v648_v8 = vmax.f32 %v636_v59, 0.0 }
 0x248   : > { %v992_v61 = vmax.f32 %v977_v53, 0.0  ;;  %v981_v63 = vadd.f32 %v980_v57, %v540_v56  ;;  %656 = vadd.xlane.f32.xlu1 %v655_v58  ;;  %v649_v6 = vmax.f32 %v638_v15, 0.0  ;;  %v1018_v17 = vmul.f32 %v991_v60, %v991_v60 }
 0x249   : > { %v982_v1 = vpop.f32.mrf.mxu0  ;;  %v679_v62 = vadd.f32 %v674_v5, %v673_v4  ;;  %v643_v22 = vpop.f32.mrf.mxu1  ;;  %v675_v26 = vmul.f32 %v648_v8, %v648_v8  ;;  %v642_v29 = vadd.f32 %v641_v10, %v1614_v54 }
 0x24a   : > { %v983_v2 = vadd.f32 %v982_v1, %v540_v56  ;;  %v1000_v16 = vadd.f32 %v992_v61, %v991_v60  ;;  %v993_v18 = vmax.f32 %v981_v63, 0.0  ;;  %v676_v3 = vmul.f32 %v649_v6, %v649_v6 }
 0x24b   : > { %v1019_v21 = vmul.f32 %v992_v61, %v992_v61  ;;  %v986_v23 = vpop.f32.mrf.mxu0  ;;  %v644_v24 = vadd.f32 %v643_v22, %v1614_v54  ;;  %v658_v33 = vadd.f32 %v649_v6, %v648_v8  ;;  %v650_v0 = vmax.f32 %v642_v29, 0.0 }
 0x24c   : > { %v994_v20 = vmax.f32 %v983_v2, 0.0  ;;  %1001 = vadd.xlane.f32.xlu0 %v1000_v16  ;;  %v682_v19 = vadd.f32 %v676_v3, %v675_v26  ;;  %v1020_v11 = vmul.f32 %v993_v18, %v993_v18  ;;  %v987_v34 = vadd.f32 %v986_v23, %v1614_v54 }
 0x24d   : > { %v1024_v7 = vadd.f32 %v1019_v21, %v1018_v17  ;;  %v988_v27 = vpop.f32.mrf.mxu0  ;;  %v651_v30 = vmax.f32 %v644_v24, 0.0  ;;  %v677_v38 = vmul.f32 %v650_v0, %v650_v0 }
 0x24e   : > { %v1003_v31 = vadd.f32 %v994_v20, %v993_v18  ;;  %v1021_v25 = vmul.f32 %v994_v20, %v994_v20  ;;  %v989_v32 = vadd.f32 %v988_v27, %v1614_v54  ;;  %v995_v13 = vmax.f32 %v987_v34, 0.0 }
 0x24f   : > { %v661_v36 = vadd.f32 %v651_v30, %v650_v0  ;;  %v678_v37 = vmul.f32 %v651_v30, %v651_v30 }
 0x250   : > { %680 = vadd.xlane.f32.xlu0 %v679_v62  ;;  %1004 = vadd.xlane.f32.xlu1 %v1003_v31  ;;  %v1027_v9 = vadd.f32 %v1021_v25, %v1020_v11  ;;  %v996_v35 = vmax.f32 %v989_v32, 0.0  ;;  %v1022_v40 = vmul.f32 %v995_v13, %v995_v13 }
 0x251   : > { %v685_v39 = vadd.f32 %v678_v37, %v677_v38 }
 0x252   : > { %v1006_v55 = vadd.f32 %v996_v35, %v995_v13  ;;  %v1023_v56 = vmul.f32 %v996_v35, %v996_v35 }
 0x254   : > { %1025 = vadd.xlane.f32.xlu0 %v1024_v7  ;;  %683 = vadd.xlane.f32.xlu1 %v682_v19  ;;  %v1030_v41 = vadd.f32 %v1023_v56, %v1022_v40 }
 0x258   : > { %1028 = vadd.xlane.f32.xlu1 %v1027_v9  ;;  %659 = vadd.xlane.f32.xlu0 %v658_v33 }
 0x25c   : > { %662 = vadd.xlane.f32.xlu0 %v661_v36 }
 0x260   : > { %1007 = vadd.xlane.f32.xlu0 %v1006_v55 }
 0x264   : > { %686 = vadd.xlane.f32.xlu0 %v685_v39 }
 0x268   : > { %1031 = vadd.xlane.f32.xlu0 %v1030_v41 }
 0x2d1   : > { %v657_v54 = vpop.xlane.xlu1 %656 }
 0x2d5   : > { %v1002_v42 = vpop.xlane.xlu0 %1001 }
 0x2d6   : > { %v1010_v43 = vadd.f32 %v1002_v42, %v657_v54 }
 0x2d8   : > { %1039 = vst.msk [vmem:[%s1620_s8 + $0x8] sm:$0xff] %vm1037_vm11, %v1010_v43 }
 0x2d9   : > { %v1005_v44 = vpop.xlane.xlu1 %1004  ;;  %v681_v28 = vpop.xlane.xlu0 %680 }
 0x2dd   : > { %v684_v45 = vpop.xlane.xlu1 %683  ;;  %v1026_v14 = vpop.xlane.xlu0 %1025 }
 0x2de   : > { %v1034_v46 = vadd.f32 %v1026_v14, %v681_v28 }
 0x2e0   : > { %1043 = vst.msk [vmem:[%s1620_s8 + $0x28] sm:$0xff] %vm1037_vm11, %v1034_v46 }
 0x2e1   : > { %v1029_v12 = vpop.xlane.xlu1 %1028  ;;  %v660_v47 = vpop.xlane.xlu0 %659 }
 0x2e2   : > { %v1035_v48 = vadd.f32 %v1029_v12, %v684_v45  ;;  %v1011_v49 = vadd.f32 %v1005_v44, %v660_v47 }
 0x2e4   : > { %1044 = vst.msk [vmem:[%s1620_s8 + $0x30] sm:$0xff] %vm1037_vm11, %v1035_v48  ;;  %1040 = vst.msk [vmem:[%s1620_s8 + $0x10] sm:$0xff] %vm1037_vm11, %v1011_v49 }
 0x2e5   : > { %v663_v50 = vpop.xlane.xlu0 %662 }
 0x2e9   : > { %v1008_v51 = vpop.xlane.xlu0 %1007 }
 0x2ea   : > { %v1012_v52 = vadd.f32 %v1008_v51, %v663_v50 }
 0x2ec   : > { %1041 = vst.msk [vmem:[%s1620_s8 + $0x18] sm:$0xff] %vm1037_vm11, %v1012_v52 }
 0x2ed   : > { %v687_v15 = vpop.xlane.xlu0 %686 }
 0x2f1   : > { %v1032_v53 = vpop.xlane.xlu0 %1031 }
 0x2f2   : > { %v1036_v57 = vadd.f32 %v1032_v53, %v687_v15 }
 0x2f4   : > { %1045 = vst.msk [vmem:[%s1620_s8 + $0x38] sm:$0xff] %vm1037_vm11, %v1036_v57 }
 0x2f5 PF: > { %s15_s18 = sadd.s32 1, %s1174_s18  }
 0x2f6   : > { %p12_p5 = scmp.ge.s32.totalorder %s15_s18, 4  }
 0x2f8   :  { %14 = sbr.rel (!%p12_p5) target bundleno = 1 (0x1), region = 71 }

// kernel: inception_block_pallas.3
= control target key start
LH: loop header
LB: loop body
LE: loop exit
PB: predicated region body
PF: predicated region fallthrough
CT: control target
= control target key end

     0   :  { %12 = vsyncpa [#allocation3], 0  ;;  %s1973_s0 = inlined_call_operand.vmem [shape: f32[4,21,256], index: 0, kind: input, shape index: {}]   ;;  %s1974_s1 = inlined_call_operand.vmem [shape: f32[24,21], index: 1, kind: input, shape index: {}]   ;;  %s1975_s2 = inlined_call_operand.vmem [shape: f32[24,1], index: 2, kind: input, shape index: {}]   ;;  %s1976_s3 = inlined_call_operand.vmem [shape: f32[24,85], index: 3, kind: input, shape index: {}]   ;;  %s1977_s4 = inlined_call_operand.vmem [shape: f32[24,1], index: 4, kind: input, shape index: {}]   ;;  %s1978_s5 = inlined_call_operand.vmem [shape: f32[32,1], index: 5, kind: input, shape index: {}]   ;;  %s1979_s6 = inlined_call_operand.vmem [shape: f32[32,1], index: 6, kind: input, shape index: {}]   ;;  %s1980_s7 = inlined_call_operand.hbm [shape: f32[4,32,256], index: 7, kind: output, shape index: {}]  }
   0x1   :  { %14 = vsyncpa [#allocation3 + $0x1], 0  ;;  %s1406_s24 = smov 0   ;;  %s1408_s25 = smov 0  }
   0x2   :  { %s1410_s26 = smov 0   ;;  %s1412_s27 = smov 0  }
   0x3 LB: > { %s1427_s28 = sadd.s32 4294967295, %s1355_s27   ;;  %s1184_s29 = sadd.s32 4294967294, %s1355_s27   ;;  %s1355_s27 = sphi %s1412_s27, %s1986_s27   ;;  %s1351_s26 = sphi %s1410_s26, %s1985_s26   ;;  %s1347_s25 = sphi %s1408_s25, %s1984_s25   ;;  %s1343_s24 = sphi %s1406_s24, %s1983_s24  }
   0x4   : > { %s1431_s30 = sadd.s32 1, %s1355_s27   ;;  %s179_s8 = sadd.s32 1, %s1351_s26 }
   0x5   : > { %s176_s9 = ssub.s32 %s1355_s27, %s1431_s30  ;;  %p189_p0 = scmp.ne.s32.totalorder %s1351_s26, %s1347_s25 }
   0x6   : > { %p177_p1 = scmp.eq.s32.totalorder %s176_s9, 0  ;;  %p190_p2 = scmp.eq.s32.totalorder %s1427_s28, 1 }
   0x7   : > { %p195_p3 = scmp.ne.s32.totalorder %s1347_s25, %s1343_s24  ;;  %p196_p4 = scmp.eq.s32.totalorder %s1184_s29, 1 }
   0x8   : > { %s1442_s10 = scalar_select %p177_p1, %s1351_s26, %s179_s8  }
   0x9   : > { %p1444_p5 = por %p190_p2, %p189_p0  ;;  %p1448_p6 = por %p196_p4, %p195_p3 }
   0xa   : > { %p1187_p7 = scmp.ge.s32.totalorder %s1355_s27, 1  ;;  %p242_p8 = scmp.lt.s32.totalorder %s1355_s27, 3 }
   0xc   : > { %p243_p9 = pnand %p1187_p7, %p242_p8 }
   0xd   : > { %s1189_s13 = sshll.u32 (!%p243_p9), %s1427_s28, 1  ;;  %s1359_s9 = smov (!%p243_p9), 1  }
   0xe   : > { %246 = sbr.rel (%p243_p9) target bundleno = 620 (0x26c), region = 48  ;;  %p276_p10 = scmp.lt.s32.totalorder (!%p243_p9), %s1189_s13, 3 }
   0xf   : > { %s1360_s15 = smov (!%p243_p9), 127   ;;  %s1361_s16 = smov (!%p243_p9), 126  }
  0x10   : > { %s1362_s17 = smov (!%p243_p9), 2   ;;  %s272_s20 = sand.u32 (!%p243_p9), 1, %s1347_s25  }
  0x11   : > { %s1244_s23 = sshll.u32 (!%p243_p9), %s1427_s28, 11  ;;  %s1933_s28 = scalar_lea.sflag (!%p243_p9), [#allocation3], %s272_s20 }
  0x12   : > { %s1925_s14 = scalar_lea.hbm (!%p243_p9), %s1980_s7, %s1244_s23 }
  0x13   : > { %v1357_v0 = vmov 0.0   ;;  %v323_v1 = vld [vmem:[%s1975_s2 + $0x10] sm:$0xff]  ;;  %v1358_v2 = vmov 0   ;;  %s1988_s13 = smov (!%p276_p10, %s1189_s13), 3  ;;  %v322_v3 = vld [vmem:[%s1975_s2 + $0x8] sm:$0xff]  ;;  %vm369_vm0 = vcmask 1044480   ;;  %v283_v22 = vlaneseq }
  0x14   : > { %440 = vmatprep.mubr.f32.mxu1 %v1357_v0  ;;  %854 = vmatprep.mubr.f32.mxu0 %v1357_v0  ;;  %s1245_s18 = smul.u32 48, %s1988_s13  ;;  %v318_v16 = vld [vmem:[%s1974_s1] sm:$0xff]  ;;  %vm359_vm1 = vcmask 171008   ;;  %v319_v17 = vld [vmem:[%s1974_s1 + $0x8] sm:$0xff]  ;;  %v320_v18 = vld [vmem:[%s1974_s1 + $0x10] sm:$0xff]  ;;  %vm608_vm10 = vcmask 695296  }
  0x15   : > { %1293 = vset.pattern.permute.xlu0 %v1358_v2  ;;  %1294 = vset.pattern.permute.xlu1 %v1358_v2  ;;  %v1579_v24 = vand.u32 127, %v283_v22 }
  0x16   : > { %356 = vperm.xlu0 %1293, %v323_v1   ;;  %s280_s21 = scalar_lea.vmem %s1973_s0, %s1245_s18 }
  0x17   : > { %v1466_v4 = vld [vmem:[%s280_s21 + $0x28] sm:$0x1f]  ;;  %v1468_v5 = vld [vmem:[%s280_s21 + $0x58] sm:$0x1f]  ;;  %v1470_v6 = vld [vmem:[%s280_s21 + $0x20] sm:$0x1f] }
  0x18   : > { %1191 = vmatprep.subr.msk.mxu1 %vm369_vm0, %v1466_v4  ;;  %1213 = vmatprep.subr.msk.mxu0 %vm369_vm0, %v1468_v5  ;;  %v1476_v7 = vld [vmem:[%s280_s21 + $0x50] sm:$0x1f]  ;;  %v1478_v8 = vld [vmem:[%s280_s21 + $0x18] sm:$0xff]  ;;  %v1480_v9 = vld [vmem:[%s280_s21 + $0x48] sm:$0xff]  ;;  %v1582_v25 = vadd.s32 4294967295, %v1579_v24  ;;  %vm477_vm2 = vcmp.lt.s32.totalorder %v1579_v24, 1 }
  0x19   : > { %1192 = vmatpush1.msk.msra.mxu1 %vm369_vm0, %v1470_v6  ;;  %1214 = vmatpush1.msk.msra.mxu0 %vm369_vm0, %v1476_v7  ;;  %v1486_v10 = vld [vmem:[%s280_s21 + $0x10] sm:$0xff]  ;;  %v1488_v11 = vld [vmem:[%s280_s21 + $0x40] sm:$0xff]  ;;  %v1490_v12 = vld [vmem:[%s280_s21 + $0x8] sm:$0xff]  ;;  %vm512_vm4 = vcmp.lt.s32.totalorder %v1579_v24, 127  ;;  %v1594_v31 = vadd.s32 128, %v1579_v24  ;;  %vm584_vm6 = vcmp.lt.s32.totalorder %v1579_v24, 126 }
  0x1a   : > { %351 = vperm.xlu0 %1293, %v322_v3   ;;  %404 = vmatprep.subr.mxu1 %v1478_v8  ;;  %v1494_v13 = vld [vmem:[%s280_s21 + $0x38] sm:$0xff]  ;;  %v1496_v14 = vld [vmem:[%s280_s21] sm:$0xff]  ;;  %v1498_v15 = vld [vmem:[%s280_s21 + $0x30] sm:$0xff]  ;;  %vm296_vm3 = vcmp.ge.s32.totalorder %v1582_v25, 0  ;;  %vm555_vm8 = vcmp.lt.s32.totalorder %v1579_v24, 2  ;;  %s1188_s21 = sshll.u32 %s272_s20, 7 }
  0x1b   : > { %818 = vmatprep.subr.mxu0 %v1480_v9  ;;  %405 = vmatpush1.msra.mxu1 %v1486_v10  ;;  %v1605_v38 = vadd.s32 1, %v1594_v31  ;;  %s1890_s22 = scalar_lea.vmem [#allocation2], %s1188_s21 }
  0x1c   : > { %819 = vmatpush1.msra.mxu0 %v1488_v11  ;;  %406 = vmatprep.subr.mxu1 %v1490_v12  ;;  %s1122_s29 = sshll.u32 %s1890_s22, 4  ;;  %s1927_s29 = int_to_ptr.vmem [resolvable:$true] %s1122_s29 }
  0x1d   : > { %820 = vmatprep.subr.mxu0 %v1494_v13  ;;  %407 = vmatpush1.msra.mxu1 %v1496_v14  ;;  %vm307_vm5 = vcmp.lt.s32.totalorder %v1605_v38, 256 }
  0x1e   : > { %821 = vmatpush1.msra.mxu0 %v1498_v15  ;;  %1193 = vmatmul.mubr.msk.f32.vlgmr.msra.gmra.mxu1 %vm359_vm1, %v318_v16 }
  0x1f   : > { %1215 = vmatmul.mubr.msk.f32.vlgmr.msra.gmra.mxu0 %vm359_vm1, %v318_v16  ;;  %446 = vmatprep.mubr.f32.mxu1 %v1357_v0 }
  0x20   : > { %860 = vmatprep.mubr.f32.mxu0 %v1357_v0  ;;  %469 = vrot.lane.b32.xlu1 %v1470_v6, %s1359_s9 }
  0x21   : > { %883 = vrot.lane.b32.xlu0 %v1476_v7, %s1359_s9 }
  0x22   : > { %1194 = vmatmul.mubr.msk.f32.gmra.mxu1 %vm359_vm1, %v319_v17 }
  0x23   : > { %1216 = vmatmul.mubr.msk.f32.gmra.mxu0 %vm359_vm1, %v319_v17  ;;  %452 = vmatprep.mubr.f32.mxu1 %v1357_v0 }
  0x24   : > { %866 = vmatprep.mubr.f32.mxu0 %v1357_v0  ;;  %475 = vrot.lane.b32.xlu1 %v1466_v4, %s1359_s9 }
  0x25   : > { %504 = vrot.lane.b32.xlu0 %v1470_v6, %s1360_s15 }
  0x26   : > { %1195 = vmatmul.mubr.msk.f32.gmra.mxu1 %vm359_vm1, %v320_v18 }
  0x27   : > { %1217 = vmatmul.mubr.msk.f32.gmra.mxu0 %vm359_vm1, %v320_v18  ;;  %688 = vmatprep.mubr.f32.mxu1 %v1357_v0 }
  0x28   : > { %1057 = vmatprep.mubr.f32.mxu0 %v1357_v0  ;;  %889 = vrot.lane.b32.xlu1 %v1468_v5, %s1359_s9 }
  0x29   : > { %913 = vrot.lane.b32.xlu0 %v1476_v7, %s1360_s15 }
  0x2c   : > { %510 = vrot.lane.b32.xlu1 %v1466_v4, %s1360_s15 }
  0x2d   : > { %467 = vrot.lane.b32.xlu0 %v1486_v10, %s1359_s9 }
  0x30   : > { %919 = vrot.lane.b32.xlu1 %v1468_v5, %s1360_s15 }
  0x31   : > { %881 = vrot.lane.b32.xlu0 %v1488_v11, %s1359_s9 }
  0x34   : > { %473 = vrot.lane.b32.xlu1 %v1478_v8, %s1359_s9 }
  0x35   : > { %502 = vrot.lane.b32.xlu0 %v1486_v10, %s1360_s15 }
  0x38   : > { %887 = vrot.lane.b32.xlu1 %v1480_v9, %s1359_s9 }
  0x39   : > { %911 = vrot.lane.b32.xlu0 %v1488_v11, %s1360_s15 }
  0x3c   : > { %508 = vrot.lane.b32.xlu1 %v1478_v8, %s1360_s15 }
  0x3d   : > { %465 = vrot.lane.b32.xlu0 %v1496_v14, %s1359_s9 }
  0x40   : > { %917 = vrot.lane.b32.xlu1 %v1480_v9, %s1360_s15 }
  0x41   : > { %879 = vrot.lane.b32.xlu0 %v1498_v15, %s1359_s9 }
  0x44   : > { %471 = vrot.lane.b32.xlu1 %v1490_v12, %s1359_s9 }
  0x45   : > { %500 = vrot.lane.b32.xlu0 %v1496_v14, %s1360_s15 }
  0x48   : > { %885 = vrot.lane.b32.xlu1 %v1494_v13, %s1359_s9 }
  0x49   : > { %909 = vrot.lane.b32.xlu0 %v1498_v15, %s1360_s15 }
  0x4c   : > { %506 = vrot.lane.b32.xlu1 %v1490_v12, %s1360_s15 }
  0x50   : > { %915 = vrot.lane.b32.xlu1 %v1494_v13, %s1360_s15 }
  0x91   : > { %v1575_v19 = vpop.permute.xlu0 %356 }
  0x92   : > { %v470_v20 = vpop.permute.xlu1 %469 }
  0x95   : > { %v1577_v21 = vpop.permute.xlu0 %351 }
  0x96   : > { %v476_v23 = vpop.permute.xlu1 %475 }
  0x97   : > { %v480_v28 = vsel %vm477_vm2, %v470_v20, %v476_v23  ;;  %v483_v29 = vsel %vm477_vm2, %v476_v23, %v470_v20 }
  0x98   : > { %v492_v32 = vsel %vm296_vm3, %v483_v29, -inf  ;;  %v499_v35 = vmax.f32 %v480_v28, %v1466_v4 }
  0x99   : > { %v884_v26 = vpop.permute.xlu0 %883  ;;  %v498_v34 = vmax.f32 %v492_v32, %v1470_v6 }
  0x9a   : > { %v890_v27 = vpop.permute.xlu1 %889 }
  0x9b   : > { %v896_v30 = vsel %vm477_vm2, %v890_v27, %v884_v26  ;;  %v893_v36 = vsel %vm477_vm2, %v884_v26, %v890_v27 }
  0x9c   : > { %v901_v33 = vsel %vm296_vm3, %v896_v30, -inf  ;;  %v908_v43 = vmax.f32 %v893_v36, %v1468_v5 }
  0x9d   : > { %v505_v37 = vpop.permute.xlu0 %504  ;;  %v907_v42 = vmax.f32 %v901_v33, %v1476_v7 }
  0x9e   : > { %v511_v39 = vpop.permute.xlu1 %510 }
  0x9f   : > { %v515_v40 = vsel %vm512_vm4, %v505_v37, %v511_v39  ;;  %v518_v41 = vsel %vm512_vm4, %v511_v39, %v505_v37 }
  0xa0   : > { %v528_v44 = vsel %vm307_vm5, %v518_v41, -inf  ;;  %v533_v45 = vmax.f32 %v498_v34, %v515_v40 }
  0xa1   : > { %v534_v46 = vmax.f32 %v499_v35, %v528_v44  ;;  %v914_v47 = vpop.permute.xlu0 %913 }
  0xa2   : > { %v920_v48 = vpop.permute.xlu1 %919 }
  0xa3   : > { %v923_v49 = vsel %vm512_vm4, %v914_v47, %v920_v48  ;;  %v926_v50 = vsel %vm512_vm4, %v920_v48, %v914_v47  ;;  %1196 = vmatprep.subr.msk.mxu1 %vm369_vm0, %v534_v46 }
  0xa4   : > { %v932_v51 = vsel %vm307_vm5, %v926_v50, -inf  ;;  %v937_v52 = vmax.f32 %v907_v42, %v923_v49  ;;  %1197 = vmatpush1.msk.msra.mxu1 %vm369_vm0, %v533_v45 }
  0xa5   : > { %v938_v53 = vmax.f32 %v908_v43, %v932_v51  ;;  %v468_v55 = vpop.permute.xlu0 %467 }
  0xa6   : > { %v474_v54 = vpop.permute.xlu1 %473 }
  0xa7   : > { %v482_v56 = vsel %vm477_vm2, %v474_v54, %v468_v55  ;;  %1218 = vmatprep.subr.msk.mxu0 %vm369_vm0, %v938_v53  ;;  %v479_v58 = vsel %vm477_vm2, %v468_v55, %v474_v54 }
  0xa8   : > { %1219 = vmatpush1.msk.msra.mxu0 %vm369_vm0, %v937_v52  ;;  %v490_v57 = vsel %vm296_vm3, %v482_v56, -inf  ;;  %v497_v63 = vmax.f32 %v479_v58, %v1478_v8 }
  0xa9   : > { %v882_v60 = vpop.permute.xlu0 %881  ;;  %v496_v62 = vmax.f32 %v490_v57, %v1486_v10 }
  0xaa   : > { %v888_v59 = vpop.permute.xlu1 %887 }
  0xab   : > { %v895_v61 = vsel %vm477_vm2, %v888_v59, %v882_v60  ;;  %v892_v2 = vsel %vm477_vm2, %v882_v60, %v888_v59 }
  0xac   : > { %v899_v1 = vsel %vm296_vm3, %v895_v61, -inf  ;;  %v906_v16 = vmax.f32 %v892_v2, %v1480_v9 }
  0xad   : > { %v503_v4 = vpop.permute.xlu0 %502  ;;  %v905_v7 = vmax.f32 %v899_v1, %v1488_v11 }
  0xae   : > { %v509_v3 = vpop.permute.xlu1 %508 }
  0xaf   : > { %v514_v5 = vsel %vm512_vm4, %v503_v4, %v509_v3  ;;  %v517_v6 = vsel %vm512_vm4, %v509_v3, %v503_v4 }
  0xb0   : > { %v526_v10 = vsel %vm307_vm5, %v517_v6, -inf  ;;  %v531_v8 = vmax.f32 %v496_v62, %v514_v5 }
  0xb1   : > { %v532_v17 = vmax.f32 %v497_v63, %v526_v10  ;;  %v912_v20 = vpop.permute.xlu0 %911 }
  0xb2   : > { %v918_v18 = vpop.permute.xlu1 %917 }
  0xb3   : > { %v922_v22 = vsel %vm512_vm4, %v912_v20, %v918_v18  ;;  %v925_v23 = vsel %vm512_vm4, %v918_v18, %v912_v20  ;;  %636 = vmatprep.subr.mxu1 %v532_v17 }
  0xb4   : > { %v930_v26 = vsel %vm307_vm5, %v925_v23, -inf  ;;  %v935_v11 = vmax.f32 %v905_v7, %v922_v22  ;;  %637 = vmatpush1.msra.mxu1 %v531_v8 }
  0xb5   : > { %v936_v27 = vmax.f32 %v906_v16, %v930_v26  ;;  %v466_v29 = vpop.permute.xlu0 %465 }
  0xb6   : > { %v472_v28 = vpop.permute.xlu1 %471 }
  0xb7   : > { %v481_v9 = vsel %vm477_vm2, %v472_v28, %v466_v29  ;;  %1005 = vmatprep.subr.mxu0 %v936_v27  ;;  %v478_v32 = vsel %vm477_vm2, %v466_v29, %v472_v28  ;;  %v330_v27 = vld [vmem:[%s1978_s5] sm:$0xff]  ;;  %v333_v28 = vld [vmem:[%s1978_s5 + $0x10] sm:$0xff] }
  0xb8   : > { %1006 = vmatpush1.msra.mxu0 %v935_v11  ;;  %v488_v30 = vsel %vm296_vm3, %v481_v9, -inf  ;;  %v495_v37 = vmax.f32 %v478_v32, %v1490_v12  ;;  %v328_v11 = vld [vmem:[%s1977_s4 + $0x8] sm:$0xff]  ;;  %v331_v29 = vld [vmem:[%s1979_s6] sm:$0xff]  ;;  %v329_v32 = vld [vmem:[%s1977_s4 + $0x10] sm:$0xff] }
  0xb9   : > { %v880_v34 = vpop.permute.xlu0 %879  ;;  %v494_v36 = vmax.f32 %v488_v30, %v1496_v14  ;;  %v327_v9 = vld [vmem:[%s1977_s4] sm:$0xff]  ;;  %v336_v30 = vld [vmem:[%s1979_s6 + $0x10] sm:$0xff] }
  0xba   : > { %v886_v33 = vpop.permute.xlu1 %885 }
  0xbb   : > { %v894_v35 = vsel %vm477_vm2, %v886_v33, %v880_v34  ;;  %v891_v40 = vsel %vm477_vm2, %v880_v34, %v886_v33  ;;  %v332_v33 = vld [vmem:[%s1978_s5 + $0x8] sm:$0xff]  ;;  %v334_v34 = vld [vmem:[%s1978_s5 + $0x18] sm:$0xff] }
  0xbc   : > { %v897_v39 = vsel %vm296_vm3, %v894_v35, -inf  ;;  %v904_v46 = vmax.f32 %v891_v40, %v1494_v13  ;;  %v335_v35 = vld [vmem:[%s1979_s6 + $0x8] sm:$0xff] }
  0xbd   : > { %v501_v42 = vpop.permute.xlu0 %500  ;;  %v903_v45 = vmax.f32 %v897_v39, %v1498_v15 }
  0xbe   : > { %v507_v41 = vpop.permute.xlu1 %506 }
  0xbf   : > { %v513_v43 = vsel %vm512_vm4, %v501_v42, %v507_v41  ;;  %v516_v44 = vsel %vm512_vm4, %v507_v41, %v501_v42  ;;  %v311_v41 = vadd.s32 2, %v1594_v31 }
  0xc0   : > { %v524_v14 = vsel %vm307_vm5, %v516_v44, -inf  ;;  %v529_v12 = vmax.f32 %v494_v36, %v513_v43  ;;  %v337_v36 = vld [vmem:[%s1979_s6 + $0x18] sm:$0xff] }
  0xc1   : > { %v530_v47 = vmax.f32 %v495_v37, %v524_v14  ;;  %v910_v49 = vpop.permute.xlu0 %909  ;;  %vm315_vm7 = vcmp.lt.s32.totalorder %v311_v41, 256 }
  0xc2   : > { %v916_v48 = vpop.permute.xlu1 %915 }
  0xc3   : > { %v921_v50 = vsel %vm512_vm4, %v910_v49, %v916_v48  ;;  %v924_v51 = vsel %vm512_vm4, %v916_v48, %v910_v49  ;;  %638 = vmatprep.subr.mxu1 %v530_v47 }
  0xc4   : > { %v928_v52 = vsel %vm307_vm5, %v924_v51, -inf  ;;  %v933_v15 = vmax.f32 %v903_v45, %v921_v50  ;;  %639 = vmatpush1.msra.mxu1 %v529_v12 }
  0xc5   : > { %v934_v53 = vmax.f32 %v904_v46, %v928_v52 }
  0xc7   : > { %1007 = vmatprep.subr.mxu0 %v934_v53 }
  0xc8   : > { %1008 = vmatpush1.msra.mxu0 %v933_v15 }
  0xde   : > { %v1684_v13 = vpop.f32.mrf.mxu1 }
  0xdf   : > { %v1682_v54 = vpop.f32.mrf.mxu0 }
  0xe0   : > { %v1686_v55 = vpop.f32.mrf.mxu1 }
  0xe1   : > { %v1688_v56 = vpop.f32.mrf.mxu0 }
  0xe2   : > { %v448_v57 = vpop.f32.mrf.mxu1 }
  0xe3   : > { %v862_v58 = vpop.f32.mrf.mxu0  ;;  %v449_v59 = vadd.f32 %v448_v57, %v1577_v21 }
  0xe4   : > { %v450_v60 = vpop.f32.mrf.mxu1  ;;  %v863_v63 = vadd.f32 %v862_v58, %v1577_v21 }
  0xe5   : > { %v864_v61 = vpop.f32.mrf.mxu0  ;;  %v1691_v62 = vmax.f32 %v449_v59, 0.0  ;;  %v451_v1 = vadd.f32 %v450_v60, %v1577_v21 }
  0xe6   : > { %v454_v2 = vpop.f32.mrf.mxu1  ;;  %v865_v4 = vadd.f32 %v864_v61, %v1577_v21  ;;  %v1700_v7 = vmax.f32 %v863_v63, 0.0 }
  0xe7   : > { %v1695_v3 = vmax.f32 %v451_v1, 0.0  ;;  %543 = vrot.lane.b32.xlu0 %v1691_v62, %s1360_s15  ;;  %v868_v5 = vpop.f32.mrf.mxu0  ;;  %v455_v10 = vadd.f32 %v454_v2, %v1575_v19  ;;  %v286_v2 = vadd.s32 4294967294, %v1579_v24  ;;  %v326_v24 = vld [vmem:[%s1976_s3 + $0x10] sm:$0xff] }
  0xe8   : > { %v456_v6 = vpop.f32.mrf.mxu1  ;;  %v1705_v8 = vmax.f32 %v865_v4, 0.0  ;;  %v869_v18 = vadd.f32 %v868_v5, %v1575_v19 }
  0xe9   : > { %545 = vrot.lane.b32.xlu1 %v1695_v3, %s1360_s15  ;;  %v457_v16 = vadd.f32 %v456_v6, %v1575_v19  ;;  %v870_v21 = vpop.f32.mrf.mxu0  ;;  %v1710_v17 = vmax.f32 %v455_v10, 0.0  ;;  %vm288_vm9 = vcmp.ge.s32.totalorder %v286_v2, 0 }
  0xea   : > { %v871_v22 = vadd.f32 %v870_v21, %v1575_v19  ;;  %v1719_v23 = vmax.f32 %v869_v18, 0.0  ;;  %v321_v19 = vld [vmem:[%s1975_s2] sm:$0xff] }
  0xeb   : > { %947 = vrot.lane.b32.xlu0 %v1700_v7, %s1360_s15  ;;  %v1715_v20 = vmax.f32 %v457_v16, 0.0 }
  0xec   : > { %v1722_v26 = vmax.f32 %v871_v22, 0.0 }
  0xed   : > { %949 = vrot.lane.b32.xlu1 %v1705_v8, %s1360_s15 }
  0xef   : > { %580 = vrot.lane.b32.xlu0 %v1710_v17, %s1361_s16 }
  0xf1   : > { %582 = vrot.lane.b32.xlu1 %v1715_v20, %s1361_s16 }
  0xf3   : > { %979 = vrot.lane.b32.xlu0 %v1719_v23, %s1361_s16 }
  0xf5   : > { %981 = vrot.lane.b32.xlu1 %v1722_v26, %s1361_s16 }
  0xf7   : > { %572 = vrot.lane.b32.xlu0 %v1710_v17, %s1360_s15 }
  0xf9   : > { %574 = vrot.lane.b32.xlu1 %v1715_v20, %s1360_s15 }
  0xfb   : > { %971 = vrot.lane.b32.xlu0 %v1719_v23, %s1360_s15 }
  0xfd   : > { %973 = vrot.lane.b32.xlu1 %v1722_v26, %s1360_s15  ;;  %s1363_s15 = smov [#allocation2]  }
  0xfe   : > { %s1299_s16 = sshll.u32 %s1363_s15, 4  ;;  %s1300_s16 = int_to_ptr.vmem [resolvable:$false] %s1299_s16 }
  0xff   : > { %564 = vrot.lane.b32.xlu0 %v1710_v17, %s1359_s9  ;;  %p1302_p0 = scmp.lt.s32.totalorder %s1927_s29, %s1300_s16 }
 0x101   : > { %566 = vrot.lane.b32.xlu1 %v1715_v20, %s1359_s9 }
 0x103   : > { %963 = vrot.lane.b32.xlu0 %v1719_v23, %s1359_s9 }
 0x105   : > { %965 = vrot.lane.b32.xlu1 %v1722_v26, %s1359_s9 }
 0x107   : > { %551 = vrot.lane.b32.xlu0 %v1710_v17, %s1362_s17 }
 0x109   : > { %553 = vrot.lane.b32.xlu1 %v1715_v20, %s1362_s17 }
 0x10b   : > { %955 = vrot.lane.b32.xlu0 %v1719_v23, %s1362_s17 }
 0x10d   : > { %957 = vrot.lane.b32.xlu1 %v1722_v26, %s1362_s17  ;;  %s1301_s17 = scalar_lea.vmem %s1300_s16, 4096 }
 0x10f   : > { %535 = vrot.lane.b32.xlu0 %v1691_v62, %s1359_s9 }
 0x111   : > { %537 = vrot.lane.b32.xlu1 %v1695_v3, %s1359_s9 }
 0x113   : > { %939 = vrot.lane.b32.xlu0 %v1700_v7, %s1359_s9 }
 0x115   : > { %941 = vrot.lane.b32.xlu1 %v1705_v8, %s1359_s9  ;;  %s1295_s9 = scalar_lea.vmem %s1927_s29, 2048 }
 0x116   : > { %p1296_p11 = scmp.ne.s32.totalorder %s1927_s29, %s1295_s9  ;;  %p1303_p1 = scmp.lt.s32.totalorder %s1301_s17, %s1295_s9 }
 0x117   : > { %346 = vperm.xlu0 %1293, %v321_v19  }
 0x118   : > { %p1297_p12 = pnand %p1296_p11, %p1444_p5  ;;  %p1304_p2 = por %p1303_p1, %p1302_p0 }
 0x119   : > { %595 = vperm.xlu1 %1294, %v327_v9  }
 0x11a   : > { %p1298_p13 = pneg %p1297_p12 }
 0x11b   : > { %600 = vperm.xlu0 %1293, %v328_v11  }
 0x11c   : > { %p1305_p3 = pnand %p1304_p2, %p1298_p13 }
 0x11d   : > { %605 = vperm.xlu1 %1294, %v329_v32  }
 0x11f   : > { %715 = vperm.xlu0 %1293, %v330_v27  }
 0x121   : > { %731 = vperm.xlu1 %1294, %v332_v33  }
 0x123   : > { %736 = vperm.xlu0 %1293, %v333_v28  }
 0x125   : > { %741 = vperm.xlu1 %1294, %v334_v34  }
 0x127   : > { %722 = vperm.xlu0 %1293, %v331_v29  }
 0x129   : > { %752 = vperm.xlu1 %1294, %v335_v35  }
 0x12b   : > { %757 = vperm.xlu0 %1293, %v336_v30  }
 0x12d   : > { %762 = vperm.xlu1 %1294, %v337_v36  }
 0x159   : > { %v544_v37 = vpop.permute.xlu0 %543 }
 0x15b   : > { %v546_v39 = vpop.permute.xlu1 %545 }
 0x15c   : > { %v548_v18 = vsel %vm512_vm4, %v546_v39, %v544_v37 }
 0x15d   : > { %v1790_v40 = vpop.permute.xlu0 %947 }
 0x15f   : > { %v1793_v42 = vpop.permute.xlu1 %949 }
 0x160   : > { %v952_v11 = vsel %vm512_vm4, %v1793_v42, %v1790_v40  ;;  %v951_v27 = vsel %vm512_vm4, %v1790_v40, %v1793_v42 }
 0x161   : > { %v581_v43 = vpop.permute.xlu0 %580 }
 0x163   : > { %v583_v44 = vpop.permute.xlu1 %582 }
 0x164   : > { %v585_v45 = vsel %vm584_vm6, %v581_v43, %v583_v44  ;;  %v586_v14 = vsel %vm584_vm6, %v583_v44, %v581_v43 }
 0x165   : > { %1198 = vmatprep.subr.msk.mxu1 %vm315_vm7, %v586_v14  ;;  %v980_v12 = vpop.permute.xlu0 %979 }
 0x166   : > { %641 = vmatpush1.msra.mxu1 %v585_v45 }
 0x167   : > { %v982_v46 = vpop.permute.xlu1 %981 }
 0x168   : > { %v983_v47 = vsel %vm584_vm6, %v980_v12, %v982_v46  ;;  %v984_v48 = vsel %vm584_vm6, %v982_v46, %v980_v12 }
 0x169   : > { %1220 = vmatprep.subr.msk.mxu0 %vm315_vm7, %v984_v48  ;;  %v573_v49 = vpop.permute.xlu0 %572 }
 0x16a   : > { %1010 = vmatpush1.msra.mxu0 %v983_v47 }
 0x16b   : > { %v575_v50 = vpop.permute.xlu1 %574 }
 0x16c   : > { %v576_v31 = vsel %vm512_vm4, %v573_v49, %v575_v50  ;;  %v577_v51 = vsel %vm512_vm4, %v575_v50, %v573_v49 }
 0x16d   : > { %1199 = vmatprep.subr.msk.mxu1 %vm307_vm5, %v577_v51  ;;  %v972_v52 = vpop.permute.xlu0 %971 }
 0x16e   : > { %643 = vmatpush1.msra.mxu1 %v576_v31 }
 0x16f   : > { %v974_v15 = vpop.permute.xlu1 %973  ;;  %644 = vmatprep.subr.mxu1 %v1715_v20  ;;  %v547_v20 = vsel %vm512_vm4, %v544_v37, %v546_v39 }
 0x170   : > { %v975_v53 = vsel %vm512_vm4, %v972_v52, %v974_v15  ;;  %v976_v57 = vsel %vm512_vm4, %v974_v15, %v972_v52  ;;  %645 = vmatpush1.msra.mxu1 %v1710_v17 }
 0x171   : > { %1221 = vmatprep.subr.msk.mxu0 %vm307_vm5, %v976_v57  ;;  %v565_v58 = vpop.permute.xlu0 %564 }
 0x172   : > { %1012 = vmatpush1.msra.mxu0 %v975_v53 }
 0x173   : > { %v567_v59 = vpop.permute.xlu1 %566  ;;  %1013 = vmatprep.subr.mxu0 %v1722_v26 }
 0x174   : > { %v569_v60 = vsel %vm477_vm2, %v567_v59, %v565_v58  ;;  %1014 = vmatpush1.msra.mxu0 %v1719_v23  ;;  %v568_v61 = vsel %vm477_vm2, %v565_v58, %v567_v59 }
 0x175   : > { %646 = vmatprep.subr.mxu1 %v568_v61  ;;  %v964_v63 = vpop.permute.xlu0 %963 }
 0x176   : > { %1200 = vmatpush1.msk.msra.mxu1 %vm296_vm3, %v569_v60 }
 0x177   : > { %v966_v1 = vpop.permute.xlu1 %965 }
 0x178   : > { %v968_v4 = vsel %vm477_vm2, %v966_v1, %v964_v63  ;;  %v967_v5 = vsel %vm477_vm2, %v964_v63, %v966_v1 }
 0x179   : > { %1015 = vmatprep.subr.mxu0 %v967_v5  ;;  %v552_v6 = vpop.permute.xlu0 %551 }
 0x17a   : > { %1222 = vmatpush1.msk.msra.mxu0 %vm296_vm3, %v968_v4 }
 0x17b   : > { %v554_v10 = vpop.permute.xlu1 %553 }
 0x17c   : > { %v557_v16 = vsel %vm555_vm8, %v554_v10, %v552_v6  ;;  %v556_v21 = vsel %vm555_vm8, %v552_v6, %v554_v10 }
 0x17d   : > { %648 = vmatprep.subr.mxu1 %v556_v21  ;;  %v956_v17 = vpop.permute.xlu0 %955 }
 0x17e   : > { %1201 = vmatpush1.msk.msra.mxu1 %vm288_vm9, %v557_v16 }
 0x17f   : > { %v958_v22 = vpop.permute.xlu1 %957  ;;  %1202 = vmatprep.subr.msk.mxu1 %vm307_vm5, %v548_v18 }
 0x180   : > { %v960_v23 = vsel %vm555_vm8, %v958_v22, %v956_v17  ;;  %651 = vmatpush1.msra.mxu1 %v547_v20  ;;  %v959_v26 = vsel %vm555_vm8, %v956_v17, %v958_v22 }
 0x181   : > { %652 = vmatprep.subr.mxu1 %v1695_v3  ;;  %1017 = vmatprep.subr.mxu0 %v959_v26  ;;  %v536_v19 = vpop.permute.xlu0 %535 }
 0x182   : > { %653 = vmatpush1.msra.mxu1 %v1691_v62  ;;  %1223 = vmatpush1.msk.msra.mxu0 %vm288_vm9, %v960_v23  ;;  %v324_v62 = vld [vmem:[%s1976_s3] sm:$0xff] }
 0x183   : > { %v538_v28 = vpop.permute.xlu1 %537  ;;  %1224 = vmatprep.subr.msk.mxu0 %vm307_vm5, %v952_v11 }
 0x184   : > { %v540_v3 = vsel %vm477_vm2, %v538_v28, %v536_v19  ;;  %1020 = vmatpush1.msra.mxu0 %v951_v27  ;;  %v539_v29 = vsel %vm477_vm2, %v536_v19, %v538_v28 }
 0x185   : > { %654 = vmatprep.subr.mxu1 %v539_v29  ;;  %1021 = vmatprep.subr.mxu0 %v1705_v8  ;;  %v940_v38 = vpop.permute.xlu0 %939  ;;  %v325_v8 = vld [vmem:[%s1976_s3 + $0x8] sm:$0xff] }
 0x186   : > { %1203 = vmatpush1.msk.msra.mxu1 %vm296_vm3, %v540_v3  ;;  %1022 = vmatpush1.msra.mxu0 %v1700_v7 }
 0x187   : > { %v942_v9 = vpop.permute.xlu1 %941  ;;  %1204 = vmatmul.mubr.msk.f32.vlgmr.msra.gmra.mxu1 %vm608_vm10, %v324_v62 }
 0x188   : > { %v944_v30 = vsel %vm477_vm2, %v942_v9, %v940_v38  ;;  %v943_v32 = vsel %vm477_vm2, %v940_v38, %v942_v9  ;;  %694 = vmatprep.mubr.f32.mxu1 %v1357_v0 }
 0x189   : > { %1023 = vmatprep.subr.mxu0 %v943_v32 }
 0x18a   : > { %1225 = vmatpush1.msk.msra.mxu0 %vm296_vm3, %v944_v30 }
 0x18b   : > { %1205 = vmatmul.mubr.msk.f32.gmra.mxu1 %vm608_vm10, %v325_v8  ;;  %1226 = vmatmul.mubr.msk.f32.vlgmr.msra.gmra.mxu0 %vm608_vm10, %v324_v62 }
 0x18c   : > { %700 = vmatprep.mubr.f32.mxu1 %v1357_v0  ;;  %1063 = vmatprep.mubr.f32.mxu0 %v1357_v0 }
 0x18f   : > { %1206 = vmatmul.mubr.msk.f32.gmra.mxu1 %vm608_vm10, %v326_v24  ;;  %1227 = vmatmul.mubr.msk.f32.gmra.mxu0 %vm608_vm10, %v325_v8 }
 0x190   : > { %1069 = vmatprep.mubr.f32.mxu0 %v1357_v0 }
 0x192   : > { %v347_v25 = vpop.permute.xlu0 %346 }
 0x193   : > { %1228 = vmatmul.mubr.msk.f32.gmra.mxu0 %vm608_vm10, %v326_v24  ;;  %v443_v34 = vadd.f32 %v1684_v13, %v347_v25  ;;  %v445_v35 = vadd.f32 %v1686_v55, %v347_v25  ;;  %v857_v36 = vadd.f32 %v1682_v54, %v347_v25  ;;  %v859_v37 = vadd.f32 %v1688_v56, %v347_v25 }
 0x194   : > { %v596_v56 = vpop.permute.xlu1 %595 }
 0x195   : > { %v459_v40 = vmax.f32 %v443_v34, 0.0  ;;  %v460_v41 = vmax.f32 %v445_v35, 0.0  ;;  %v873_v0 = vmax.f32 %v857_v36, 0.0  ;;  %v874_v42 = vmax.f32 %v859_v37, 0.0 }
 0x196   : > { %v1879_v7 = vpop.permute.xlu0 %600 }
 0x198   : > { %v606_v47 = vpop.permute.xlu1 %605 }
 0x19a   : > { %v716_v33 = vpop.permute.xlu0 %715 }
 0x19b   : > { %v718_v43 = vmul.f32 %v716_v33, %v459_v40  ;;  %v719_v44 = vmul.f32 %v716_v33, %v460_v41  ;;  %v1082_v45 = vmul.f32 %v873_v0, %v716_v33  ;;  %v1083_v14 = vmul.f32 %v874_v42, %v716_v33 }
 0x19c   : > { %v732_v48 = vpop.permute.xlu1 %731 }
 0x19e   : > { %v1886_v39 = vpop.permute.xlu0 %736 }
 0x1a0   : > { %v1896_v49 = vpop.permute.xlu1 %741 }
 0x1a2   : > { %v723_v13 = vpop.permute.xlu0 %722 }
 0x1a3   : > { %v725_v12 = vadd.f32 %v723_v13, %v718_v43  ;;  %v726_v55 = vadd.f32 %v723_v13, %v719_v44  ;;  %v1084_v46 = vadd.f32 %v1082_v45, %v723_v13  ;;  %v1085_v54 = vadd.f32 %v1083_v14, %v723_v13 }
 0x1a4   : > { %v753_v58 = vpop.permute.xlu1 %752 }
 0x1a5   : > { %727 = vst [vmem:[%s1890_s22] sm:$0xff] %v725_v12  ;;  %728 = vst [vmem:[%s1890_s22 + $0x8] sm:$0xff] %v726_v55 }
 0x1a6   : > { %1229 = vst [vmem:[%s1890_s22 + $0x40] sm:$0xff] %v1084_v46  ;;  %1230 = vst [vmem:[%s1890_s22 + $0x48] sm:$0xff] %v1085_v54  ;;  %v758_v20 = vpop.permute.xlu0 %757 }
 0x1a8   : > { %v763_v37 = vpop.permute.xlu1 %762 }
 0x247   : > { %v690_v50 = vpop.f32.mrf.mxu1 }
 0x248   : > { %v691_v31 = vadd.f32 %v690_v50, %v596_v56 }
 0x249   : > { %v692_v51 = vpop.f32.mrf.mxu1 }
 0x24a   : > { %v707_v52 = vmax.f32 %v691_v31, 0.0  ;;  %v693_v15 = vadd.f32 %v692_v51, %v596_v56 }
 0x24b   : > { %v696_v53 = vpop.f32.mrf.mxu1  ;;  %v1059_v57 = vpop.f32.mrf.mxu0 }
 0x24c   : > { %v744_v59 = vmul.f32 %v732_v48, %v707_v52  ;;  %v708_v60 = vmax.f32 %v693_v15, 0.0  ;;  %v697_v61 = vadd.f32 %v696_v53, %v1879_v7  ;;  %v1060_v63 = vadd.f32 %v1059_v57, %v596_v56 }
 0x24d   : > { %v698_v1 = vpop.f32.mrf.mxu1  ;;  %v1061_v2 = vpop.f32.mrf.mxu0 }
 0x24e   : > { %v765_v4 = vadd.f32 %v753_v58, %v744_v59  ;;  %v745_v5 = vmul.f32 %v732_v48, %v708_v60  ;;  %v709_v6 = vmax.f32 %v697_v61, 0.0  ;;  %v1076_v10 = vmax.f32 %v1060_v63, 0.0 }
 0x24f   : > { %v699_v16 = vadd.f32 %v698_v1, %v1879_v7  ;;  %v1062_v21 = vadd.f32 %v1061_v2, %v596_v56  ;;  %v702_v17 = vpop.f32.mrf.mxu1  ;;  %v1065_v18 = vpop.f32.mrf.mxu0 }
 0x250   : > { %771 = vst [vmem:[%s1890_s22 + $0x10] sm:$0xff] %v765_v4  ;;  %v766_v22 = vadd.f32 %v753_v58, %v745_v5  ;;  %v746_v23 = vmul.f32 %v1886_v39, %v709_v6  ;;  %v1089_v26 = vmul.f32 %v1076_v10, %v732_v48  ;;  %v703_v19 = vadd.f32 %v702_v17, %v606_v47 }
 0x251   : > { %v710_v11 = vmax.f32 %v699_v16, 0.0  ;;  %v1077_v27 = vmax.f32 %v1062_v21, 0.0  ;;  %v1066_v28 = vadd.f32 %v1065_v18, %v1879_v7  ;;  %v704_v3 = vpop.f32.mrf.mxu1  ;;  %v1067_v29 = vpop.f32.mrf.mxu0 }
 0x252   : > { %772 = vst [vmem:[%s1890_s22 + $0x18] sm:$0xff] %v766_v22  ;;  %v767_v62 = vadd.f32 %v758_v20, %v746_v23  ;;  %v1095_v38 = vadd.f32 %v1089_v26, %v753_v58  ;;  %v711_v9 = vmax.f32 %v703_v19, 0.0  ;;  %v705_v30 = vadd.f32 %v704_v3, %v606_v47 }
 0x253   : > { %v747_v32 = vmul.f32 %v1886_v39, %v710_v11  ;;  %v1090_v8 = vmul.f32 %v1077_v27, %v732_v48  ;;  %v1078_v24 = vmax.f32 %v1066_v28, 0.0  ;;  %v1068_v25 = vadd.f32 %v1067_v29, %v1879_v7  ;;  %v1071_v33 = vpop.f32.mrf.mxu0 }
 0x254   : > { %773 = vst [vmem:[%s1890_s22 + $0x20] sm:$0xff] %v767_v62  ;;  %1231 = vst [vmem:[%s1890_s22 + $0x50] sm:$0xff] %v1095_v38  ;;  %v748_v34 = vmul.f32 %v1896_v49, %v711_v9  ;;  %v712_v35 = vmax.f32 %v705_v30, 0.0  ;;  %v1072_v36 = vadd.f32 %v1071_v33, %v606_v47 }
 0x255   : > { %v768_v40 = vadd.f32 %v758_v20, %v747_v32  ;;  %v1096_v41 = vadd.f32 %v1090_v8, %v753_v58  ;;  %v1091_v0 = vmul.f32 %v1078_v24, %v1886_v39  ;;  %v1079_v42 = vmax.f32 %v1068_v25, 0.0  ;;  %v1073_v7 = vpop.f32.mrf.mxu0 }
 0x256   : > { %v769_v43 = vadd.f32 %v763_v37, %v748_v34  ;;  %v749_v44 = vmul.f32 %v1896_v49, %v712_v35  ;;  %v1080_v45 = vmax.f32 %v1072_v36, 0.0  ;;  %v1074_v14 = vadd.f32 %v1073_v7, %v606_v47 }
 0x257   : > { %774 = vst [vmem:[%s1890_s22 + $0x28] sm:$0xff] %v768_v40  ;;  %1232 = vst [vmem:[%s1890_s22 + $0x58] sm:$0xff] %v1096_v41  ;;  %v1097_v13 = vadd.f32 %v1091_v0, %v758_v20  ;;  %v1092_v12 = vmul.f32 %v1079_v42, %v1886_v39 }
 0x258   : > { %775 = vst [vmem:[%s1890_s22 + $0x30] sm:$0xff] %v769_v43  ;;  %v770_v55 = vadd.f32 %v763_v37, %v749_v44  ;;  %v1093_v46 = vmul.f32 %v1080_v45, %v1896_v49  ;;  %v1081_v54 = vmax.f32 %v1074_v14, 0.0 }
 0x259   : > { %1233 = vst [vmem:[%s1890_s22 + $0x60] sm:$0xff] %v1097_v13  ;;  %v1098_v56 = vadd.f32 %v1092_v12, %v758_v20 }
 0x25a   : > { %776 = vst [vmem:[%s1890_s22 + $0x38] sm:$0xff] %v770_v55  ;;  %v1099_v47 = vadd.f32 %v1093_v46, %v763_v37  ;;  %v1094_v48 = vmul.f32 %v1081_v54, %v1896_v49 }
 0x25b   : > { %1234 = vst [vmem:[%s1890_s22 + $0x68] sm:$0xff] %v1098_v56 }
 0x25c   : > { %1235 = vst [vmem:[%s1890_s22 + $0x70] sm:$0xff] %v1099_v47  ;;  %v1100_v39 = vadd.f32 %v1094_v48, %v763_v37 }
 0x25e   : > { %1236 = vst [vmem:[%s1890_s22 + $0x78] sm:$0xff] %v1100_v39 }
 0x25f   : > { %1308 = shalt.err (!%p1305_p3)
}
 0x260   : > { %s1309_s18 = scalar_lea.hbm %s1925_s14, 2048  ;;  %s1313_s21 = scalar_lea.hbm %s1980_s7, 4096 }
 0x261   : > { %p1310_p4 = scmp.ne.s32.totalorder %s1925_s14, %s1309_s18  ;;  %p1314_p9 = scmp.lt.s32.totalorder %s1925_s14, %s1980_s7 }
 0x262   : > { %p1315_p10 = scmp.lt.s32.totalorder %s1313_s21, %s1309_s18 }
 0x263   : > { %p1311_p7 = pnand %p1310_p4, %p1444_p5 }
 0x264   : > { %p1316_p11 = por %p1315_p10, %p1314_p9 }
 0x265   : > { %p1312_p8 = pneg %p1311_p7 }
 0x267   : > { %p1317_p12 = pnand %p1316_p11, %p1312_p8 }
 0x269   : > { %1320 = shalt.err (!%p1317_p12)
}
 0x26a   : > { %s1364_s8 = smov 256   ;;  %s1365_s13 = smov 16  }
 0x26b   : > { %1246 = dma.vmem_to_hbm [thread:$0]  (%p1444_p5), %s1927_s29, 2048, %s1925_s14, %s1933_s28, %s1364_s8, %s1364_s8, %s1365_s13  }
 0x26c PF: > { %p1252_p13 = scmp.ge.s32.totalorder %s1355_s27, 2  ;;  %s1137_s9 = sand.u32 1, %s1343_s24  }
 0x26d   : > { %s1138_s15 = scalar_lea.sflag [#allocation3], %s1137_s9 }
 0x26e   : > { %p1249_p0 = pnand %p1252_p13, %p1448_p6 }
 0x270   : > { %p1250_p1 = pneg %p1249_p0 }
 0x272   : > { %1338 = dma.done.wait (%p1250_p1), %s1138_s15, 2048  }
 0x273   : > { %1340 = vsyncadd (%p1250_p1), %s1138_s15, 4294965248  ;;  %p17_p2 = scmp.ge.s32.totalorder %s1431_s30, 4   ;;  %s1983_s24 = smov %s1347_s25 }
 0x274   : > { %s1984_s25 = smov %s1351_s26  ;;  %s1985_s26 = smov %s1442_s10 }
 0x275   : > { %s1986_s27 = smov %s1431_s30  ;;  %19 = sbr.rel (!%p17_p2) target bundleno = 3 (0x3), region = 85 }
 0x27a   :  { %1143 = vsyncpa [#allocation3], 1 }
 0x27b   :  { %1145 = vsyncpa [#allocation3 + $0x1], 1 }

</bundles_post_ra>
